<compile_context>
chip_gen: v6e
topology: v6e:2x2x1
jax: 0.10.0
libtpu: 0.0.40
codegen_flags: <defaults>
</compile_context>

<pallas_src>
import math

import numpy as np
import jax
import jax.numpy as jnp
from jax.experimental import pallas as pl
from jax.experimental.pallas import tpu as pltpu  # noqa: F401  (TPU backend)

# ---------------- config (small, consistent with GPTConfig) ----------------
VOCAB      = 64
VOCAB_PAD  = 128            # pad lm_head output to a full 128-lane vreg
BLOCK_SIZE = 16
N_LAYER    = 2
N_HEAD     = 4
N_EMBD     = 32
HEAD_DIM   = N_EMBD // N_HEAD
LN_EPS     = 1e-5
NEG_INF    = -1e30


# ---------------- in-kernel helpers (f32 elementwise math) ----------------
def _layernorm(x, w, b):
    mu = jnp.mean(x, axis=-1, keepdims=True)
    var = jnp.mean((x - mu) ** 2, axis=-1, keepdims=True)
    return (x - mu) * jax.lax.rsqrt(var + LN_EPS) * w + b


def _gelu_tanh(x):
    # GPT-2 uses the tanh-approximate GELU
    return 0.5 * x * (1.0 + jnp.tanh(math.sqrt(2.0 / math.pi) * (x + 0.044715 * x * x * x)))


def _softmax_rows(att):
    # numerically stable softmax; reciprocal goes to the EUP slot
    att = att - jnp.max(att, axis=-1, keepdims=True)
    e = jnp.exp(att)
    return e * pl.reciprocal(jnp.sum(e, axis=-1, keepdims=True), approx=True)


# ---------------- fully fused GPT forward kernel ----------------
def gpt_kernel(x_ref, mask_ref,
               ln1w_ref, ln1b_ref, wqkv_ref, bqkv_ref, wproj_ref, bproj_ref,
               ln2w_ref, ln2b_ref, wfc_ref, bfc_ref, wfcp_ref, bfcp_ref,
               lnfw_ref, lnfb_ref, wte_ref, out_ref):
    f32, bf16 = jnp.float32, jnp.bfloat16
    C = N_EMBD
    scale = 1.0 / math.sqrt(HEAD_DIM)

    x = x_ref[...].astype(f32)          # (BTp, C) activation slab, VMEM-resident
    mask = mask_ref[...]                # (BTp, BTp) additive causal + batch-block mask

    for l in range(N_LAYER):            # static layer loop, weights indexed on leading dim
        # ----- causal self-attention (pre-LN) -----
        xn = _layernorm(x, ln1w_ref[l], ln1b_ref[l])
        qkv = jnp.dot(xn.astype(bf16), wqkv_ref[l],
                      preferred_element_type=f32) + bqkv_ref[l]      # (BTp, 3C)
        q = qkv[:, :C] * scale                                       # fold 1/sqrt(hd) into q
        k = qkv[:, C:2 * C]
        v = qkv[:, 2 * C:]

        heads = []
        for h in range(N_HEAD):         # static head loop; each matmul covers all batch rows
            s0, s1 = h * HEAD_DIM, (h + 1) * HEAD_DIM
            qh = q[:, s0:s1].astype(bf16)
            kh = k[:, s0:s1].astype(bf16)
            vh = v[:, s0:s1].astype(bf16)
            att = jnp.einsum('td,sd->ts', qh, kh,
                             preferred_element_type=f32) + mask      # (BTp, BTp)
            p = _softmax_rows(att)                                   # f32
            heads.append(jnp.dot(p.astype(bf16), vh,
                                 preferred_element_type=f32))        # (BTp, hd)
        y = jnp.concatenate(heads, axis=-1)                          # (BTp, C)
        y = jnp.dot(y.astype(bf16), wproj_ref[l],
                    preferred_element_type=f32) + bproj_ref[l]
        x = x + y                                                    # residual (f32)

        # ----- MLP (pre-LN) -----
        xn2 = _layernorm(x, ln2w_ref[l], ln2b_ref[l])
        hdn = jnp.dot(xn2.astype(bf16), wfc_ref[l],
                      preferred_element_type=f32) + bfc_ref[l]       # (BTp, 4C) lane-dense
        hdn = _gelu_tanh(hdn)
        m = jnp.dot(hdn.astype(bf16), wfcp_ref[l],
                    preferred_element_type=f32) + bfcp_ref[l]
        x = x + m

    # ----- final LayerNorm + tied lm_head (x @ wte^T, contraction on dim 1) -----
    xn = _layernorm(x, lnfw_ref[...], lnfb_ref[...])
    logits = jnp.einsum('tc,vc->tv', xn.astype(bf16), wte_ref[...],
                        preferred_element_type=f32)                  # (BTp, VOCAB_PAD)
    out_ref[...] = logits.astype(out_ref.dtype)


# ---------------- parameter init (deterministic, module-consistent shapes) --
def init_params(key):
    std = 1.0 / math.sqrt(N_EMBD)
    proj_std = 1.0 / math.sqrt(2 * N_LAYER)     # GPT_SCALE_INIT for residual projections
    keys = iter(jax.random.split(key, 2 + 4 * N_LAYER))

    def nrm(shape, s=std):
        return (s * jax.random.normal(next(keys), shape)).astype(jnp.float32)

    C = N_EMBD
    params = {
        "wte": nrm((VOCAB, C)),                 # tied with lm_head
        "wpe": nrm((BLOCK_SIZE, C)),
        "lnf_w": jnp.ones((1, C), jnp.float32),
        "lnf_b": jnp.zeros((1, C), jnp.float32),
        # per-layer weights stacked along a leading layer dim
        "ln1_w": jnp.ones((N_LAYER, 1, C), jnp.float32),
        "ln1_b": jnp.zeros((N_LAYER, 1, C), jnp.float32),
        "ln2_w": jnp.ones((N_LAYER, 1, C), jnp.float32),
        "ln2_b": jnp.zeros((N_LAYER, 1, C), jnp.float32),
        "w_qkv": jnp.stack([nrm((C, 3 * C)) for _ in range(N_LAYER)]),
        "b_qkv": jnp.zeros((N_LAYER, 1, 3 * C), jnp.float32),
        "w_proj": jnp.stack([nrm((C, C), proj_std) for _ in range(N_LAYER)]),
        "b_proj": jnp.zeros((N_LAYER, 1, C), jnp.float32),
        "w_fc": jnp.stack([nrm((C, 4 * C)) for _ in range(N_LAYER)]),
        "b_fc": jnp.zeros((N_LAYER, 1, 4 * C), jnp.float32),
        "w_fcp": jnp.stack([nrm((4 * C, C), proj_std) for _ in range(N_LAYER)]),
        "b_fcp": jnp.zeros((N_LAYER, 1, C), jnp.float32),
    }
    return params


def _build_mask(B, T, BT_pad):
    """Additive causal + batch-block mask over the folded (padded) rows.

    Built with numpy so it is a baked compile-time constant under jit.
    Padded rows attend only to themselves (diag unmasked) so softmax stays finite.
    """
    r = np.arange(BT_pad)
    batch = r // T
    same_b = batch[:, None] == batch[None, :]
    causal = (r[:, None] % T) >= (r[None, :] % T)
    mask = np.where(same_b & causal, 0.0, NEG_INF).astype(np.float32)
    return mask


# ---------------- GPT forward (single fused pallas_call) ----------------
@jax.jit
def gpt_forward(params, idx, targets=None):
    B, T = idx.shape
    assert T <= BLOCK_SIZE
    C = N_EMBD
    bf16 = jnp.bfloat16

    BT = B * T
    BT_pad = ((BT + 7) // 8) * 8          # pad folded rows to a sublane multiple

    # embedding gathers / residual glue stay in JAX
    tok_emb = jnp.take(params["wte"], idx, axis=0)            # (B, T, C)
    pos_emb = params["wpe"][:T][None, :, :]                   # (1, T, C)
    x = (tok_emb + pos_emb).astype(jnp.float32).reshape(BT, C)
    if BT_pad != BT:
        x = jnp.pad(x, ((0, BT_pad - BT), (0, 0)))

    # compile-time additive mask over the folded padded rows
    mask = jnp.asarray(_build_mask(B, T, BT_pad))

    # tied lm_head weight: pad vocab rows to 128 for lane-dense output stores
    wte_pad = jnp.zeros((VOCAB_PAD, C), bf16).at[:VOCAB].set(params["wte"].astype(bf16))

    logits_pad = pl.pallas_call(
        gpt_kernel,
        out_shape=jax.ShapeDtypeStruct((BT_pad, VOCAB_PAD), jnp.float32),
    )(x, mask,
      params["ln1_w"], params["ln1_b"],
      params["w_qkv"].astype(bf16), params["b_qkv"],
      params["w_proj"].astype(bf16), params["b_proj"],
      params["ln2_w"], params["ln2_b"],
      params["w_fc"].astype(bf16), params["b_fc"],
      params["w_fcp"].astype(bf16), params["b_fcp"],
      params["lnf_w"], params["lnf_b"], wte_pad)

    logits = logits_pad[:BT, :VOCAB].reshape(B, T, VOCAB)

    loss = None
    if targets is not None:
        # cross-entropy with ignore_index=-1 (matches torch.nn.functional.cross_entropy)
        flat_logits = logits.reshape(-1, VOCAB)
        flat_t = targets.reshape(-1)
        valid = flat_t != -1
        t_safe = jnp.where(valid, flat_t, 0)
        logp = jax.nn.log_softmax(flat_logits, axis=-1)
        nll = -jnp.take_along_axis(logp, t_safe[:, None], axis=-1)[:, 0]
        loss = jnp.sum(jnp.where(valid, nll, 0.0)) / jnp.maximum(jnp.sum(valid), 1)
    return logits, loss


if __name__ == "__main__":
    key = jax.random.PRNGKey(0)
    pkey, ikey, tkey = jax.random.split(key, 3)
    params = init_params(pkey)

    B, T = 2, 8
    idx = jax.random.randint(ikey, (B, T), 0, VOCAB, dtype=jnp.int32)
    targets = jax.random.randint(tkey, (B, T), 0, VOCAB, dtype=jnp.int32)

    logits, loss = gpt_forward(params, idx)
    logits = jax.block_until_ready(logits)
    assert logits.shape == (B, T, VOCAB)
    assert loss is None
    assert bool(jnp.all(jnp.isfinite(logits)))

    logits2, loss2 = gpt_forward(params, idx, targets)
    loss2 = jax.block_until_ready(loss2)
    assert bool(jnp.isfinite(loss2))

    print("KERNEL_OK")
</pallas_src>

<mosaic_0001>
module attributes {stable_mosaic.version = 11 : i64} {
  func.func @gpt_kernel(%arg0: memref<16x32xf32, #tpu.memory_space<vmem>>, %arg1: memref<16x16xf32, #tpu.memory_space<vmem>>, %arg2: memref<2x1x32xf32, #tpu.memory_space<vmem>>, %arg3: memref<2x1x32xf32, #tpu.memory_space<vmem>>, %arg4: memref<2x32x96xbf16, #tpu.memory_space<vmem>>, %arg5: memref<2x1x96xf32, #tpu.memory_space<vmem>>, %arg6: memref<2x32x32xbf16, #tpu.memory_space<vmem>>, %arg7: memref<2x1x32xf32, #tpu.memory_space<vmem>>, %arg8: memref<2x1x32xf32, #tpu.memory_space<vmem>>, %arg9: memref<2x1x32xf32, #tpu.memory_space<vmem>>, %arg10: memref<2x32x128xbf16, #tpu.memory_space<vmem>>, %arg11: memref<2x1x128xf32, #tpu.memory_space<vmem>>, %arg12: memref<2x128x32xbf16, #tpu.memory_space<vmem>>, %arg13: memref<2x1x32xf32, #tpu.memory_space<vmem>>, %arg14: memref<1x32xf32, #tpu.memory_space<vmem>>, %arg15: memref<1x32xf32, #tpu.memory_space<vmem>>, %arg16: memref<128x32xbf16, #tpu.memory_space<vmem>>, %arg17: memref<16x128xf32, #tpu.memory_space<vmem>>) attributes {dimension_semantics = [], scalar_prefetch = 0 : i64, scratch_operands = 0 : i64, tpu.core_type = #tpu.core_type<tc>} {
    %c0 = arith.constant 0 : index
    %c0_0 = arith.constant 0 : index
    %0 = vector.load %arg0[%c0, %c0_0] : memref<16x32xf32, #tpu.memory_space<vmem>>, vector<16x32xf32>
    %c0_1 = arith.constant 0 : index
    %c0_2 = arith.constant 0 : index
    %1 = vector.load %arg1[%c0_1, %c0_2] : memref<16x16xf32, #tpu.memory_space<vmem>>, vector<16x16xf32>
    %c0_3 = arith.constant 0 : index
    %c0_4 = arith.constant 0 : index
    %c0_5 = arith.constant 0 : index
    %2 = vector.load %arg2[%c0_3, %c0_4, %c0_5] : memref<2x1x32xf32, #tpu.memory_space<vmem>>, vector<1x1x32xf32>
    %3 = vector.shape_cast %2 : vector<1x1x32xf32> to vector<1x32xf32>
    %c0_6 = arith.constant 0 : index
    %c0_7 = arith.constant 0 : index
    %c0_8 = arith.constant 0 : index
    %4 = vector.load %arg3[%c0_6, %c0_7, %c0_8] : memref<2x1x32xf32, #tpu.memory_space<vmem>>, vector<1x1x32xf32>
    %5 = vector.shape_cast %4 : vector<1x1x32xf32> to vector<1x32xf32>
    %cst = arith.constant dense<0.000000e+00> : vector<16xf32>
    %6 = vector.multi_reduction <add>, %0, %cst [1] : vector<16x32xf32> to vector<16xf32>
    %7 = vector.shape_cast %6 : vector<16xf32> to vector<16x1xf32>
    %cst_9 = arith.constant 3.200000e+01 : f32
    %8 = vector.broadcast %cst_9 : f32 to vector<16x1xf32>
    %9 = arith.divf %7, %8 : vector<16x1xf32>
    %10 = vector.broadcast %9 : vector<16x1xf32> to vector<16x32xf32>
    %11 = arith.subf %0, %10 : vector<16x32xf32>
    %12 = arith.mulf %11, %11 : vector<16x32xf32>
    %cst_10 = arith.constant dense<0.000000e+00> : vector<16xf32>
    %13 = vector.multi_reduction <add>, %12, %cst_10 [1] : vector<16x32xf32> to vector<16xf32>
    %14 = vector.shape_cast %13 : vector<16xf32> to vector<16x1xf32>
    %cst_11 = arith.constant 3.200000e+01 : f32
    %15 = vector.broadcast %cst_11 : f32 to vector<16x1xf32>
    %16 = arith.divf %14, %15 : vector<16x1xf32>
    %17 = vector.broadcast %9 : vector<16x1xf32> to vector<16x32xf32>
    %18 = arith.subf %0, %17 : vector<16x32xf32>
    %cst_12 = arith.constant 9.99999974E-6 : f32
    %19 = vector.broadcast %cst_12 : f32 to vector<16x1xf32>
    %20 = arith.addf %16, %19 : vector<16x1xf32>
    %21 = math.rsqrt %20 : vector<16x1xf32>
    %22 = vector.broadcast %21 : vector<16x1xf32> to vector<16x32xf32>
    %23 = arith.mulf %18, %22 : vector<16x32xf32>
    %24 = vector.broadcast %3 : vector<1x32xf32> to vector<16x32xf32>
    %25 = arith.mulf %23, %24 : vector<16x32xf32>
    %26 = vector.broadcast %5 : vector<1x32xf32> to vector<16x32xf32>
    %27 = arith.addf %25, %26 : vector<16x32xf32>
    %28 = arith.truncf %27 : vector<16x32xf32> to vector<16x32xbf16>
    %c0_13 = arith.constant 0 : index
    %c0_14 = arith.constant 0 : index
    %c0_15 = arith.constant 0 : index
    %29 = vector.load %arg4[%c0_13, %c0_14, %c0_15] : memref<2x32x96xbf16, #tpu.memory_space<vmem>>, vector<1x32x96xbf16>
    %30 = vector.shape_cast %29 : vector<1x32x96xbf16> to vector<32x96xbf16>
    %cst_16 = arith.constant dense<0.000000e+00> : vector<16x96xf32>
    %31 = tpu.matmul %28, %30, %cst_16 {dimension_numbers = #tpu.dot_dimension_numbers<[1], [0], [0], [1], [0, 0, 1, 1], [], []>} : vector<16x32xbf16>, vector<32x96xbf16>, vector<16x96xf32> -> vector<16x96xf32>
    %c0_17 = arith.constant 0 : index
    %c0_18 = arith.constant 0 : index
    %c0_19 = arith.constant 0 : index
    %32 = vector.load %arg5[%c0_17, %c0_18, %c0_19] : memref<2x1x96xf32, #tpu.memory_space<vmem>>, vector<1x1x96xf32>
    %33 = vector.shape_cast %32 : vector<1x1x96xf32> to vector<1x96xf32>
    %34 = vector.broadcast %33 : vector<1x96xf32> to vector<16x96xf32>
    %35 = arith.addf %31, %34 : vector<16x96xf32>
    %36 = vector.extract_strided_slice %35 {offsets = [0, 0], sizes = [16, 32], strides = [1, 1]} : vector<16x96xf32> to vector<16x32xf32>
    %cst_20 = arith.constant 0.353553385 : f32
    %37 = vector.broadcast %cst_20 : f32 to vector<16x32xf32>
    %38 = arith.mulf %36, %37 : vector<16x32xf32>
    %39 = vector.extract_strided_slice %35 {offsets = [0, 32], sizes = [16, 32], strides = [1, 1]} : vector<16x96xf32> to vector<16x32xf32>
    %40 = vector.extract_strided_slice %35 {offsets = [0, 64], sizes = [16, 32], strides = [1, 1]} : vector<16x96xf32> to vector<16x32xf32>
    %41 = vector.extract_strided_slice %38 {offsets = [0, 0], sizes = [16, 8], strides = [1, 1]} : vector<16x32xf32> to vector<16x8xf32>
    %42 = arith.truncf %41 : vector<16x8xf32> to vector<16x8xbf16>
    %43 = vector.extract_strided_slice %39 {offsets = [0, 0], sizes = [16, 8], strides = [1, 1]} : vector<16x32xf32> to vector<16x8xf32>
    %44 = arith.truncf %43 : vector<16x8xf32> to vector<16x8xbf16>
    %45 = vector.extract_strided_slice %40 {offsets = [0, 0], sizes = [16, 8], strides = [1, 1]} : vector<16x32xf32> to vector<16x8xf32>
    %46 = arith.truncf %45 : vector<16x8xf32> to vector<16x8xbf16>
    "tpu.trace_start"() <{level = 10 : i32, message = "td,sd->ts"}> : () -> ()
    %cst_21 = arith.constant dense<0.000000e+00> : vector<16x16xf32>
    %47 = tpu.matmul %42, %44, %cst_21 {dimension_numbers = #tpu.dot_dimension_numbers<[1], [1], [0], [0], [0, 0, 1, 0], [], []>} : vector<16x8xbf16>, vector<16x8xbf16>, vector<16x16xf32> -> vector<16x16xf32>
    "tpu.trace_stop"() : () -> ()
    %48 = arith.addf %47, %1 : vector<16x16xf32>
    %cst_22 = arith.constant dense<0xFF800000> : vector<16xf32>
    %49 = vector.multi_reduction <maximumf>, %48, %cst_22 [1] : vector<16x16xf32> to vector<16xf32>
    %50 = vector.shape_cast %49 : vector<16xf32> to vector<16x1xf32>
    %51 = vector.broadcast %50 : vector<16x1xf32> to vector<16x16xf32>
    %52 = arith.subf %48, %51 : vector<16x16xf32>
    %53 = math.exp %52 : vector<16x16xf32>
    %cst_23 = arith.constant dense<0.000000e+00> : vector<16xf32>
    %54 = vector.multi_reduction <add>, %53, %cst_23 [1] : vector<16x16xf32> to vector<16xf32>
    %55 = vector.shape_cast %54 : vector<16xf32> to vector<16x1xf32>
    %56 = tpu.reciprocal %55 {approx = true} : vector<16x1xf32> -> vector<16x1xf32>
    %57 = vector.broadcast %56 : vector<16x1xf32> to vector<16x16xf32>
    %58 = arith.mulf %53, %57 : vector<16x16xf32>
    %59 = arith.truncf %58 : vector<16x16xf32> to vector<16x16xbf16>
    %cst_24 = arith.constant dense<0.000000e+00> : vector<16x8xf32>
    %60 = tpu.matmul %59, %46, %cst_24 {dimension_numbers = #tpu.dot_dimension_numbers<[1], [0], [0], [1], [0, 0, 1, 1], [], []>} : vector<16x16xbf16>, vector<16x8xbf16>, vector<16x8xf32> -> vector<16x8xf32>
    %61 = vector.extract_strided_slice %38 {offsets = [0, 8], sizes = [16, 8], strides = [1, 1]} : vector<16x32xf32> to vector<16x8xf32>
    %62 = arith.truncf %61 : vector<16x8xf32> to vector<16x8xbf16>
    %63 = vector.extract_strided_slice %39 {offsets = [0, 8], sizes = [16, 8], strides = [1, 1]} : vector<16x32xf32> to vector<16x8xf32>
    %64 = arith.truncf %63 : vector<16x8xf32> to vector<16x8xbf16>
    %65 = vector.extract_strided_slice %40 {offsets = [0, 8], sizes = [16, 8], strides = [1, 1]} : vector<16x32xf32> to vector<16x8xf32>
    %66 = arith.truncf %65 : vector<16x8xf32> to vector<16x8xbf16>
    "tpu.trace_start"() <{level = 10 : i32, message = "td,sd->ts"}> : () -> ()
    %cst_25 = arith.constant dense<0.000000e+00> : vector<16x16xf32>
    %67 = tpu.matmul %62, %64, %cst_25 {dimension_numbers = #tpu.dot_dimension_numbers<[1], [1], [0], [0], [0, 0, 1, 0], [], []>} : vector<16x8xbf16>, vector<16x8xbf16>, vector<16x16xf32> -> vector<16x16xf32>
    "tpu.trace_stop"() : () -> ()
    %68 = arith.addf %67, %1 : vector<16x16xf32>
    %cst_26 = arith.constant dense<0xFF800000> : vector<16xf32>
    %69 = vector.multi_reduction <maximumf>, %68, %cst_26 [1] : vector<16x16xf32> to vector<16xf32>
    %70 = vector.shape_cast %69 : vector<16xf32> to vector<16x1xf32>
    %71 = vector.broadcast %70 : vector<16x1xf32> to vector<16x16xf32>
    %72 = arith.subf %68, %71 : vector<16x16xf32>
    %73 = math.exp %72 : vector<16x16xf32>
    %cst_27 = arith.constant dense<0.000000e+00> : vector<16xf32>
    %74 = vector.multi_reduction <add>, %73, %cst_27 [1] : vector<16x16xf32> to vector<16xf32>
    %75 = vector.shape_cast %74 : vector<16xf32> to vector<16x1xf32>
    %76 = tpu.reciprocal %75 {approx = true} : vector<16x1xf32> -> vector<16x1xf32>
    %77 = vector.broadcast %76 : vector<16x1xf32> to vector<16x16xf32>
    %78 = arith.mulf %73, %77 : vector<16x16xf32>
    %79 = arith.truncf %78 : vector<16x16xf32> to vector<16x16xbf16>
    %cst_28 = arith.constant dense<0.000000e+00> : vector<16x8xf32>
    %80 = tpu.matmul %79, %66, %cst_28 {dimension_numbers = #tpu.dot_dimension_numbers<[1], [0], [0], [1], [0, 0, 1, 1], [], []>} : vector<16x16xbf16>, vector<16x8xbf16>, vector<16x8xf32> -> vector<16x8xf32>
    %81 = vector.extract_strided_slice %38 {offsets = [0, 16], sizes = [16, 8], strides = [1, 1]} : vector<16x32xf32> to vector<16x8xf32>
    %82 = arith.truncf %81 : vector<16x8xf32> to vector<16x8xbf16>
    %83 = vector.extract_strided_slice %39 {offsets = [0, 16], sizes = [16, 8], strides = [1, 1]} : vector<16x32xf32> to vector<16x8xf32>
    %84 = arith.truncf %83 : vector<16x8xf32> to vector<16x8xbf16>
    %85 = vector.extract_strided_slice %40 {offsets = [0, 16], sizes = [16, 8], strides = [1, 1]} : vector<16x32xf32> to vector<16x8xf32>
    %86 = arith.truncf %85 : vector<16x8xf32> to vector<16x8xbf16>
    "tpu.trace_start"() <{level = 10 : i32, message = "td,sd->ts"}> : () -> ()
    %cst_29 = arith.constant dense<0.000000e+00> : vector<16x16xf32>
    %87 = tpu.matmul %82, %84, %cst_29 {dimension_numbers = #tpu.dot_dimension_numbers<[1], [1], [0], [0], [0, 0, 1, 0], [], []>} : vector<16x8xbf16>, vector<16x8xbf16>, vector<16x16xf32> -> vector<16x16xf32>
    "tpu.trace_stop"() : () -> ()
    %88 = arith.addf %87, %1 : vector<16x16xf32>
    %cst_30 = arith.constant dense<0xFF800000> : vector<16xf32>
    %89 = vector.multi_reduction <maximumf>, %88, %cst_30 [1] : vector<16x16xf32> to vector<16xf32>
    %90 = vector.shape_cast %89 : vector<16xf32> to vector<16x1xf32>
    %91 = vector.broadcast %90 : vector<16x1xf32> to vector<16x16xf32>
    %92 = arith.subf %88, %91 : vector<16x16xf32>
    %93 = math.exp %92 : vector<16x16xf32>
    %cst_31 = arith.constant dense<0.000000e+00> : vector<16xf32>
    %94 = vector.multi_reduction <add>, %93, %cst_31 [1] : vector<16x16xf32> to vector<16xf32>
    %95 = vector.shape_cast %94 : vector<16xf32> to vector<16x1xf32>
    %96 = tpu.reciprocal %95 {approx = true} : vector<16x1xf32> -> vector<16x1xf32>
    %97 = vector.broadcast %96 : vector<16x1xf32> to vector<16x16xf32>
    %98 = arith.mulf %93, %97 : vector<16x16xf32>
    %99 = arith.truncf %98 : vector<16x16xf32> to vector<16x16xbf16>
    %cst_32 = arith.constant dense<0.000000e+00> : vector<16x8xf32>
    %100 = tpu.matmul %99, %86, %cst_32 {dimension_numbers = #tpu.dot_dimension_numbers<[1], [0], [0], [1], [0, 0, 1, 1], [], []>} : vector<16x16xbf16>, vector<16x8xbf16>, vector<16x8xf32> -> vector<16x8xf32>
    %101 = vector.extract_strided_slice %38 {offsets = [0, 24], sizes = [16, 8], strides = [1, 1]} : vector<16x32xf32> to vector<16x8xf32>
    %102 = arith.truncf %101 : vector<16x8xf32> to vector<16x8xbf16>
    %103 = vector.extract_strided_slice %39 {offsets = [0, 24], sizes = [16, 8], strides = [1, 1]} : vector<16x32xf32> to vector<16x8xf32>
    %104 = arith.truncf %103 : vector<16x8xf32> to vector<16x8xbf16>
    %105 = vector.extract_strided_slice %40 {offsets = [0, 24], sizes = [16, 8], strides = [1, 1]} : vector<16x32xf32> to vector<16x8xf32>
    %106 = arith.truncf %105 : vector<16x8xf32> to vector<16x8xbf16>
    "tpu.trace_start"() <{level = 10 : i32, message = "td,sd->ts"}> : () -> ()
    %cst_33 = arith.constant dense<0.000000e+00> : vector<16x16xf32>
    %107 = tpu.matmul %102, %104, %cst_33 {dimension_numbers = #tpu.dot_dimension_numbers<[1], [1], [0], [0], [0, 0, 1, 0], [], []>} : vector<16x8xbf16>, vector<16x8xbf16>, vector<16x16xf32> -> vector<16x16xf32>
    "tpu.trace_stop"() : () -> ()
    %108 = arith.addf %107, %1 : vector<16x16xf32>
    %cst_34 = arith.constant dense<0xFF800000> : vector<16xf32>
    %109 = vector.multi_reduction <maximumf>, %108, %cst_34 [1] : vector<16x16xf32> to vector<16xf32>
    %110 = vector.shape_cast %109 : vector<16xf32> to vector<16x1xf32>
    %111 = vector.broadcast %110 : vector<16x1xf32> to vector<16x16xf32>
    %112 = arith.subf %108, %111 : vector<16x16xf32>
    %113 = math.exp %112 : vector<16x16xf32>
    %cst_35 = arith.constant dense<0.000000e+00> : vector<16xf32>
    %114 = vector.multi_reduction <add>, %113, %cst_35 [1] : vector<16x16xf32> to vector<16xf32>
    %115 = vector.shape_cast %114 : vector<16xf32> to vector<16x1xf32>
    %116 = tpu.reciprocal %115 {approx = true} : vector<16x1xf32> -> vector<16x1xf32>
    %117 = vector.broadcast %116 : vector<16x1xf32> to vector<16x16xf32>
    %118 = arith.mulf %113, %117 : vector<16x16xf32>
    %119 = arith.truncf %118 : vector<16x16xf32> to vector<16x16xbf16>
    %cst_36 = arith.constant dense<0.000000e+00> : vector<16x8xf32>
    %120 = tpu.matmul %119, %106, %cst_36 {dimension_numbers = #tpu.dot_dimension_numbers<[1], [0], [0], [1], [0, 0, 1, 1], [], []>} : vector<16x16xbf16>, vector<16x8xbf16>, vector<16x8xf32> -> vector<16x8xf32>
    %121 = tpu.concatenate %60, %80, %100, %120 in 1 : vector<16x8xf32>, vector<16x8xf32>, vector<16x8xf32>, vector<16x8xf32> -> vector<16x32xf32>
    %122 = arith.truncf %121 : vector<16x32xf32> to vector<16x32xbf16>
    %c0_37 = arith.constant 0 : index
    %c0_38 = arith.constant 0 : index
    %c0_39 = arith.constant 0 : index
    %123 = vector.load %arg6[%c0_37, %c0_38, %c0_39] : memref<2x32x32xbf16, #tpu.memory_space<vmem>>, vector<1x32x32xbf16>
    %124 = vector.shape_cast %123 : vector<1x32x32xbf16> to vector<32x32xbf16>
    %cst_40 = arith.constant dense<0.000000e+00> : vector<16x32xf32>
    %125 = tpu.matmul %122, %124, %cst_40 {dimension_numbers = #tpu.dot_dimension_numbers<[1], [0], [0], [1], [0, 0, 1, 1], [], []>} : vector<16x32xbf16>, vector<32x32xbf16>, vector<16x32xf32> -> vector<16x32xf32>
    %c0_41 = arith.constant 0 : index
    %c0_42 = arith.constant 0 : index
    %c0_43 = arith.constant 0 : index
    %126 = vector.load %arg7[%c0_41, %c0_42, %c0_43] : memref<2x1x32xf32, #tpu.memory_space<vmem>>, vector<1x1x32xf32>
    %127 = vector.shape_cast %126 : vector<1x1x32xf32> to vector<1x32xf32>
    %128 = vector.broadcast %127 : vector<1x32xf32> to vector<16x32xf32>
    %129 = arith.addf %125, %128 : vector<16x32xf32>
    %130 = arith.addf %0, %129 : vector<16x32xf32>
    %c0_44 = arith.constant 0 : index
    %c0_45 = arith.constant 0 : index
    %c0_46 = arith.constant 0 : index
    %131 = vector.load %arg8[%c0_44, %c0_45, %c0_46] : memref<2x1x32xf32, #tpu.memory_space<vmem>>, vector<1x1x32xf32>
    %132 = vector.shape_cast %131 : vector<1x1x32xf32> to vector<1x32xf32>
    %c0_47 = arith.constant 0 : index
    %c0_48 = arith.constant 0 : index
    %c0_49 = arith.constant 0 : index
    %133 = vector.load %arg9[%c0_47, %c0_48, %c0_49] : memref<2x1x32xf32, #tpu.memory_space<vmem>>, vector<1x1x32xf32>
    %134 = vector.shape_cast %133 : vector<1x1x32xf32> to vector<1x32xf32>
    %cst_50 = arith.constant dense<0.000000e+00> : vector<16xf32>
    %135 = vector.multi_reduction <add>, %130, %cst_50 [1] : vector<16x32xf32> to vector<16xf32>
    %136 = vector.shape_cast %135 : vector<16xf32> to vector<16x1xf32>
    %cst_51 = arith.constant 3.200000e+01 : f32
    %137 = vector.broadcast %cst_51 : f32 to vector<16x1xf32>
    %138 = arith.divf %136, %137 : vector<16x1xf32>
    %139 = vector.broadcast %138 : vector<16x1xf32> to vector<16x32xf32>
    %140 = arith.subf %130, %139 : vector<16x32xf32>
    %141 = arith.mulf %140, %140 : vector<16x32xf32>
    %cst_52 = arith.constant dense<0.000000e+00> : vector<16xf32>
    %142 = vector.multi_reduction <add>, %141, %cst_52 [1] : vector<16x32xf32> to vector<16xf32>
    %143 = vector.shape_cast %142 : vector<16xf32> to vector<16x1xf32>
    %cst_53 = arith.constant 3.200000e+01 : f32
    %144 = vector.broadcast %cst_53 : f32 to vector<16x1xf32>
    %145 = arith.divf %143, %144 : vector<16x1xf32>
    %146 = vector.broadcast %138 : vector<16x1xf32> to vector<16x32xf32>
    %147 = arith.subf %130, %146 : vector<16x32xf32>
    %cst_54 = arith.constant 9.99999974E-6 : f32
    %148 = vector.broadcast %cst_54 : f32 to vector<16x1xf32>
    %149 = arith.addf %145, %148 : vector<16x1xf32>
    %150 = math.rsqrt %149 : vector<16x1xf32>
    %151 = vector.broadcast %150 : vector<16x1xf32> to vector<16x32xf32>
    %152 = arith.mulf %147, %151 : vector<16x32xf32>
    %153 = vector.broadcast %132 : vector<1x32xf32> to vector<16x32xf32>
    %154 = arith.mulf %152, %153 : vector<16x32xf32>
    %155 = vector.broadcast %134 : vector<1x32xf32> to vector<16x32xf32>
    %156 = arith.addf %154, %155 : vector<16x32xf32>
    %157 = arith.truncf %156 : vector<16x32xf32> to vector<16x32xbf16>
    %c0_55 = arith.constant 0 : index
    %c0_56 = arith.constant 0 : index
    %c0_57 = arith.constant 0 : index
    %158 = vector.load %arg10[%c0_55, %c0_56, %c0_57] : memref<2x32x128xbf16, #tpu.memory_space<vmem>>, vector<1x32x128xbf16>
    %159 = vector.shape_cast %158 : vector<1x32x128xbf16> to vector<32x128xbf16>
    %cst_58 = arith.constant dense<0.000000e+00> : vector<16x128xf32>
    %160 = tpu.matmul %157, %159, %cst_58 {dimension_numbers = #tpu.dot_dimension_numbers<[1], [0], [0], [1], [0, 0, 1, 1], [], []>} : vector<16x32xbf16>, vector<32x128xbf16>, vector<16x128xf32> -> vector<16x128xf32>
    %c0_59 = arith.constant 0 : index
    %c0_60 = arith.constant 0 : index
    %c0_61 = arith.constant 0 : index
    %161 = vector.load %arg11[%c0_59, %c0_60, %c0_61] : memref<2x1x128xf32, #tpu.memory_space<vmem>>, vector<1x1x128xf32>
    %162 = vector.shape_cast %161 : vector<1x1x128xf32> to vector<1x128xf32>
    %163 = vector.broadcast %162 : vector<1x128xf32> to vector<16x128xf32>
    %164 = arith.addf %160, %163 : vector<16x128xf32>
    %cst_62 = arith.constant 5.000000e-01 : f32
    %165 = vector.broadcast %cst_62 : f32 to vector<16x128xf32>
    %166 = arith.mulf %165, %164 : vector<16x128xf32>
    %cst_63 = arith.constant 4.471500e-02 : f32
    %167 = vector.broadcast %cst_63 : f32 to vector<16x128xf32>
    %168 = arith.mulf %167, %164 : vector<16x128xf32>
    %169 = arith.mulf %168, %164 : vector<16x128xf32>
    %170 = arith.mulf %169, %164 : vector<16x128xf32>
    %171 = arith.addf %164, %170 : vector<16x128xf32>
    %cst_64 = arith.constant 0.797884583 : f32
    %172 = vector.broadcast %cst_64 : f32 to vector<16x128xf32>
    %173 = arith.mulf %172, %171 : vector<16x128xf32>
    %174 = math.tanh %173 : vector<16x128xf32>
    %cst_65 = arith.constant 1.000000e+00 : f32
    %175 = vector.broadcast %cst_65 : f32 to vector<16x128xf32>
    %176 = arith.addf %175, %174 : vector<16x128xf32>
    %177 = arith.mulf %166, %176 : vector<16x128xf32>
    %178 = arith.truncf %177 : vector<16x128xf32> to vector<16x128xbf16>
    %c0_66 = arith.constant 0 : index
    %c0_67 = arith.constant 0 : index
    %c0_68 = arith.constant 0 : index
    %179 = vector.load %arg12[%c0_66, %c0_67, %c0_68] : memref<2x128x32xbf16, #tpu.memory_space<vmem>>, vector<1x128x32xbf16>
    %180 = vector.shape_cast %179 : vector<1x128x32xbf16> to vector<128x32xbf16>
    %cst_69 = arith.constant dense<0.000000e+00> : vector<16x32xf32>
    %181 = tpu.matmul %178, %180, %cst_69 {dimension_numbers = #tpu.dot_dimension_numbers<[1], [0], [0], [1], [0, 0, 1, 1], [], []>} : vector<16x128xbf16>, vector<128x32xbf16>, vector<16x32xf32> -> vector<16x32xf32>
    %c0_70 = arith.constant 0 : index
    %c0_71 = arith.constant 0 : index
    %c0_72 = arith.constant 0 : index
    %182 = vector.load %arg13[%c0_70, %c0_71, %c0_72] : memref<2x1x32xf32, #tpu.memory_space<vmem>>, vector<1x1x32xf32>
    %183 = vector.shape_cast %182 : vector<1x1x32xf32> to vector<1x32xf32>
    %184 = vector.broadcast %183 : vector<1x32xf32> to vector<16x32xf32>
    %185 = arith.addf %181, %184 : vector<16x32xf32>
    %186 = arith.addf %130, %185 : vector<16x32xf32>
    %c1 = arith.constant 1 : index
    %c0_73 = arith.constant 0 : index
    %c0_74 = arith.constant 0 : index
    %187 = vector.load %arg2[%c1, %c0_73, %c0_74] : memref<2x1x32xf32, #tpu.memory_space<vmem>>, vector<1x1x32xf32>
    %188 = vector.shape_cast %187 : vector<1x1x32xf32> to vector<1x32xf32>
    %c1_75 = arith.constant 1 : index
    %c0_76 = arith.constant 0 : index
    %c0_77 = arith.constant 0 : index
    %189 = vector.load %arg3[%c1_75, %c0_76, %c0_77] : memref<2x1x32xf32, #tpu.memory_space<vmem>>, vector<1x1x32xf32>
    %190 = vector.shape_cast %189 : vector<1x1x32xf32> to vector<1x32xf32>
    %cst_78 = arith.constant dense<0.000000e+00> : vector<16xf32>
    %191 = vector.multi_reduction <add>, %186, %cst_78 [1] : vector<16x32xf32> to vector<16xf32>
    %192 = vector.shape_cast %191 : vector<16xf32> to vector<16x1xf32>
    %cst_79 = arith.constant 3.200000e+01 : f32
    %193 = vector.broadcast %cst_79 : f32 to vector<16x1xf32>
    %194 = arith.divf %192, %193 : vector<16x1xf32>
    %195 = vector.broadcast %194 : vector<16x1xf32> to vector<16x32xf32>
    %196 = arith.subf %186, %195 : vector<16x32xf32>
    %197 = arith.mulf %196, %196 : vector<16x32xf32>
    %cst_80 = arith.constant dense<0.000000e+00> : vector<16xf32>
    %198 = vector.multi_reduction <add>, %197, %cst_80 [1] : vector<16x32xf32> to vector<16xf32>
    %199 = vector.shape_cast %198 : vector<16xf32> to vector<16x1xf32>
    %cst_81 = arith.constant 3.200000e+01 : f32
    %200 = vector.broadcast %cst_81 : f32 to vector<16x1xf32>
    %201 = arith.divf %199, %200 : vector<16x1xf32>
    %202 = vector.broadcast %194 : vector<16x1xf32> to vector<16x32xf32>
    %203 = arith.subf %186, %202 : vector<16x32xf32>
    %cst_82 = arith.constant 9.99999974E-6 : f32
    %204 = vector.broadcast %cst_82 : f32 to vector<16x1xf32>
    %205 = arith.addf %201, %204 : vector<16x1xf32>
    %206 = math.rsqrt %205 : vector<16x1xf32>
    %207 = vector.broadcast %206 : vector<16x1xf32> to vector<16x32xf32>
    %208 = arith.mulf %203, %207 : vector<16x32xf32>
    %209 = vector.broadcast %188 : vector<1x32xf32> to vector<16x32xf32>
    %210 = arith.mulf %208, %209 : vector<16x32xf32>
    %211 = vector.broadcast %190 : vector<1x32xf32> to vector<16x32xf32>
    %212 = arith.addf %210, %211 : vector<16x32xf32>
    %213 = arith.truncf %212 : vector<16x32xf32> to vector<16x32xbf16>
    %c1_83 = arith.constant 1 : index
    %c0_84 = arith.constant 0 : index
    %c0_85 = arith.constant 0 : index
    %214 = vector.load %arg4[%c1_83, %c0_84, %c0_85] : memref<2x32x96xbf16, #tpu.memory_space<vmem>>, vector<1x32x96xbf16>
    %215 = vector.shape_cast %214 : vector<1x32x96xbf16> to vector<32x96xbf16>
    %cst_86 = arith.constant dense<0.000000e+00> : vector<16x96xf32>
    %216 = tpu.matmul %213, %215, %cst_86 {dimension_numbers = #tpu.dot_dimension_numbers<[1], [0], [0], [1], [0, 0, 1, 1], [], []>} : vector<16x32xbf16>, vector<32x96xbf16>, vector<16x96xf32> -> vector<16x96xf32>
    %c1_87 = arith.constant 1 : index
    %c0_88 = arith.constant 0 : index
    %c0_89 = arith.constant 0 : index
    %217 = vector.load %arg5[%c1_87, %c0_88, %c0_89] : memref<2x1x96xf32, #tpu.memory_space<vmem>>, vector<1x1x96xf32>
    %218 = vector.shape_cast %217 : vector<1x1x96xf32> to vector<1x96xf32>
    %219 = vector.broadcast %218 : vector<1x96xf32> to vector<16x96xf32>
    %220 = arith.addf %216, %219 : vector<16x96xf32>
    %221 = vector.extract_strided_slice %220 {offsets = [0, 0], sizes = [16, 32], strides = [1, 1]} : vector<16x96xf32> to vector<16x32xf32>
    %cst_90 = arith.constant 0.353553385 : f32
    %222 = vector.broadcast %cst_90 : f32 to vector<16x32xf32>
    %223 = arith.mulf %221, %222 : vector<16x32xf32>
    %224 = vector.extract_strided_slice %220 {offsets = [0, 32], sizes = [16, 32], strides = [1, 1]} : vector<16x96xf32> to vector<16x32xf32>
    %225 = vector.extract_strided_slice %220 {offsets = [0, 64], sizes = [16, 32], strides = [1, 1]} : vector<16x96xf32> to vector<16x32xf32>
    %226 = vector.extract_strided_slice %223 {offsets = [0, 0], sizes = [16, 8], strides = [1, 1]} : vector<16x32xf32> to vector<16x8xf32>
    %227 = arith.truncf %226 : vector<16x8xf32> to vector<16x8xbf16>
    %228 = vector.extract_strided_slice %224 {offsets = [0, 0], sizes = [16, 8], strides = [1, 1]} : vector<16x32xf32> to vector<16x8xf32>
    %229 = arith.truncf %228 : vector<16x8xf32> to vector<16x8xbf16>
    %230 = vector.extract_strided_slice %225 {offsets = [0, 0], sizes = [16, 8], strides = [1, 1]} : vector<16x32xf32> to vector<16x8xf32>
    %231 = arith.truncf %230 : vector<16x8xf32> to vector<16x8xbf16>
    "tpu.trace_start"() <{level = 10 : i32, message = "td,sd->ts"}> : () -> ()
    %cst_91 = arith.constant dense<0.000000e+00> : vector<16x16xf32>
    %232 = tpu.matmul %227, %229, %cst_91 {dimension_numbers = #tpu.dot_dimension_numbers<[1], [1], [0], [0], [0, 0, 1, 0], [], []>} : vector<16x8xbf16>, vector<16x8xbf16>, vector<16x16xf32> -> vector<16x16xf32>
    "tpu.trace_stop"() : () -> ()
    %233 = arith.addf %232, %1 : vector<16x16xf32>
    %cst_92 = arith.constant dense<0xFF800000> : vector<16xf32>
    %234 = vector.multi_reduction <maximumf>, %233, %cst_92 [1] : vector<16x16xf32> to vector<16xf32>
    %235 = vector.shape_cast %234 : vector<16xf32> to vector<16x1xf32>
    %236 = vector.broadcast %235 : vector<16x1xf32> to vector<16x16xf32>
    %237 = arith.subf %233, %236 : vector<16x16xf32>
    %238 = math.exp %237 : vector<16x16xf32>
    %cst_93 = arith.constant dense<0.000000e+00> : vector<16xf32>
    %239 = vector.multi_reduction <add>, %238, %cst_93 [1] : vector<16x16xf32> to vector<16xf32>
    %240 = vector.shape_cast %239 : vector<16xf32> to vector<16x1xf32>
    %241 = tpu.reciprocal %240 {approx = true} : vector<16x1xf32> -> vector<16x1xf32>
    %242 = vector.broadcast %241 : vector<16x1xf32> to vector<16x16xf32>
    %243 = arith.mulf %238, %242 : vector<16x16xf32>
    %244 = arith.truncf %243 : vector<16x16xf32> to vector<16x16xbf16>
    %cst_94 = arith.constant dense<0.000000e+00> : vector<16x8xf32>
    %245 = tpu.matmul %244, %231, %cst_94 {dimension_numbers = #tpu.dot_dimension_numbers<[1], [0], [0], [1], [0, 0, 1, 1], [], []>} : vector<16x16xbf16>, vector<16x8xbf16>, vector<16x8xf32> -> vector<16x8xf32>
    %246 = vector.extract_strided_slice %223 {offsets = [0, 8], sizes = [16, 8], strides = [1, 1]} : vector<16x32xf32> to vector<16x8xf32>
    %247 = arith.truncf %246 : vector<16x8xf32> to vector<16x8xbf16>
    %248 = vector.extract_strided_slice %224 {offsets = [0, 8], sizes = [16, 8], strides = [1, 1]} : vector<16x32xf32> to vector<16x8xf32>
    %249 = arith.truncf %248 : vector<16x8xf32> to vector<16x8xbf16>
    %250 = vector.extract_strided_slice %225 {offsets = [0, 8], sizes = [16, 8], strides = [1, 1]} : vector<16x32xf32> to vector<16x8xf32>
    %251 = arith.truncf %250 : vector<16x8xf32> to vector<16x8xbf16>
    "tpu.trace_start"() <{level = 10 : i32, message = "td,sd->ts"}> : () -> ()
    %cst_95 = arith.constant dense<0.000000e+00> : vector<16x16xf32>
    %252 = tpu.matmul %247, %249, %cst_95 {dimension_numbers = #tpu.dot_dimension_numbers<[1], [1], [0], [0], [0, 0, 1, 0], [], []>} : vector<16x8xbf16>, vector<16x8xbf16>, vector<16x16xf32> -> vector<16x16xf32>
    "tpu.trace_stop"() : () -> ()
    %253 = arith.addf %252, %1 : vector<16x16xf32>
    %cst_96 = arith.constant dense<0xFF800000> : vector<16xf32>
    %254 = vector.multi_reduction <maximumf>, %253, %cst_96 [1] : vector<16x16xf32> to vector<16xf32>
    %255 = vector.shape_cast %254 : vector<16xf32> to vector<16x1xf32>
    %256 = vector.broadcast %255 : vector<16x1xf32> to vector<16x16xf32>
    %257 = arith.subf %253, %256 : vector<16x16xf32>
    %258 = math.exp %257 : vector<16x16xf32>
    %cst_97 = arith.constant dense<0.000000e+00> : vector<16xf32>
    %259 = vector.multi_reduction <add>, %258, %cst_97 [1] : vector<16x16xf32> to vector<16xf32>
    %260 = vector.shape_cast %259 : vector<16xf32> to vector<16x1xf32>
    %261 = tpu.reciprocal %260 {approx = true} : vector<16x1xf32> -> vector<16x1xf32>
    %262 = vector.broadcast %261 : vector<16x1xf32> to vector<16x16xf32>
    %263 = arith.mulf %258, %262 : vector<16x16xf32>
    %264 = arith.truncf %263 : vector<16x16xf32> to vector<16x16xbf16>
    %cst_98 = arith.constant dense<0.000000e+00> : vector<16x8xf32>
    %265 = tpu.matmul %264, %251, %cst_98 {dimension_numbers = #tpu.dot_dimension_numbers<[1], [0], [0], [1], [0, 0, 1, 1], [], []>} : vector<16x16xbf16>, vector<16x8xbf16>, vector<16x8xf32> -> vector<16x8xf32>
    %266 = vector.extract_strided_slice %223 {offsets = [0, 16], sizes = [16, 8], strides = [1, 1]} : vector<16x32xf32> to vector<16x8xf32>
    %267 = arith.truncf %266 : vector<16x8xf32> to vector<16x8xbf16>
    %268 = vector.extract_strided_slice %224 {offsets = [0, 16], sizes = [16, 8], strides = [1, 1]} : vector<16x32xf32> to vector<16x8xf32>
    %269 = arith.truncf %268 : vector<16x8xf32> to vector<16x8xbf16>
    %270 = vector.extract_strided_slice %225 {offsets = [0, 16], sizes = [16, 8], strides = [1, 1]} : vector<16x32xf32> to vector<16x8xf32>
    %271 = arith.truncf %270 : vector<16x8xf32> to vector<16x8xbf16>
    "tpu.trace_start"() <{level = 10 : i32, message = "td,sd->ts"}> : () -> ()
    %cst_99 = arith.constant dense<0.000000e+00> : vector<16x16xf32>
    %272 = tpu.matmul %267, %269, %cst_99 {dimension_numbers = #tpu.dot_dimension_numbers<[1], [1], [0], [0], [0, 0, 1, 0], [], []>} : vector<16x8xbf16>, vector<16x8xbf16>, vector<16x16xf32> -> vector<16x16xf32>
    "tpu.trace_stop"() : () -> ()
    %273 = arith.addf %272, %1 : vector<16x16xf32>
    %cst_100 = arith.constant dense<0xFF800000> : vector<16xf32>
    %274 = vector.multi_reduction <maximumf>, %273, %cst_100 [1] : vector<16x16xf32> to vector<16xf32>
    %275 = vector.shape_cast %274 : vector<16xf32> to vector<16x1xf32>
    %276 = vector.broadcast %275 : vector<16x1xf32> to vector<16x16xf32>
    %277 = arith.subf %273, %276 : vector<16x16xf32>
    %278 = math.exp %277 : vector<16x16xf32>
    %cst_101 = arith.constant dense<0.000000e+00> : vector<16xf32>
    %279 = vector.multi_reduction <add>, %278, %cst_101 [1] : vector<16x16xf32> to vector<16xf32>
    %280 = vector.shape_cast %279 : vector<16xf32> to vector<16x1xf32>
    %281 = tpu.reciprocal %280 {approx = true} : vector<16x1xf32> -> vector<16x1xf32>
    %282 = vector.broadcast %281 : vector<16x1xf32> to vector<16x16xf32>
    %283 = arith.mulf %278, %282 : vector<16x16xf32>
    %284 = arith.truncf %283 : vector<16x16xf32> to vector<16x16xbf16>
    %cst_102 = arith.constant dense<0.000000e+00> : vector<16x8xf32>
    %285 = tpu.matmul %284, %271, %cst_102 {dimension_numbers = #tpu.dot_dimension_numbers<[1], [0], [0], [1], [0, 0, 1, 1], [], []>} : vector<16x16xbf16>, vector<16x8xbf16>, vector<16x8xf32> -> vector<16x8xf32>
    %286 = vector.extract_strided_slice %223 {offsets = [0, 24], sizes = [16, 8], strides = [1, 1]} : vector<16x32xf32> to vector<16x8xf32>
    %287 = arith.truncf %286 : vector<16x8xf32> to vector<16x8xbf16>
    %288 = vector.extract_strided_slice %224 {offsets = [0, 24], sizes = [16, 8], strides = [1, 1]} : vector<16x32xf32> to vector<16x8xf32>
    %289 = arith.truncf %288 : vector<16x8xf32> to vector<16x8xbf16>
    %290 = vector.extract_strided_slice %225 {offsets = [0, 24], sizes = [16, 8], strides = [1, 1]} : vector<16x32xf32> to vector<16x8xf32>
    %291 = arith.truncf %290 : vector<16x8xf32> to vector<16x8xbf16>
    "tpu.trace_start"() <{level = 10 : i32, message = "td,sd->ts"}> : () -> ()
    %cst_103 = arith.constant dense<0.000000e+00> : vector<16x16xf32>
    %292 = tpu.matmul %287, %289, %cst_103 {dimension_numbers = #tpu.dot_dimension_numbers<[1], [1], [0], [0], [0, 0, 1, 0], [], []>} : vector<16x8xbf16>, vector<16x8xbf16>, vector<16x16xf32> -> vector<16x16xf32>
    "tpu.trace_stop"() : () -> ()
    %293 = arith.addf %292, %1 : vector<16x16xf32>
    %cst_104 = arith.constant dense<0xFF800000> : vector<16xf32>
    %294 = vector.multi_reduction <maximumf>, %293, %cst_104 [1] : vector<16x16xf32> to vector<16xf32>
    %295 = vector.shape_cast %294 : vector<16xf32> to vector<16x1xf32>
    %296 = vector.broadcast %295 : vector<16x1xf32> to vector<16x16xf32>
    %297 = arith.subf %293, %296 : vector<16x16xf32>
    %298 = math.exp %297 : vector<16x16xf32>
    %cst_105 = arith.constant dense<0.000000e+00> : vector<16xf32>
    %299 = vector.multi_reduction <add>, %298, %cst_105 [1] : vector<16x16xf32> to vector<16xf32>
    %300 = vector.shape_cast %299 : vector<16xf32> to vector<16x1xf32>
    %301 = tpu.reciprocal %300 {approx = true} : vector<16x1xf32> -> vector<16x1xf32>
    %302 = vector.broadcast %301 : vector<16x1xf32> to vector<16x16xf32>
    %303 = arith.mulf %298, %302 : vector<16x16xf32>
    %304 = arith.truncf %303 : vector<16x16xf32> to vector<16x16xbf16>
    %cst_106 = arith.constant dense<0.000000e+00> : vector<16x8xf32>
    %305 = tpu.matmul %304, %291, %cst_106 {dimension_numbers = #tpu.dot_dimension_numbers<[1], [0], [0], [1], [0, 0, 1, 1], [], []>} : vector<16x16xbf16>, vector<16x8xbf16>, vector<16x8xf32> -> vector<16x8xf32>
    %306 = tpu.concatenate %245, %265, %285, %305 in 1 : vector<16x8xf32>, vector<16x8xf32>, vector<16x8xf32>, vector<16x8xf32> -> vector<16x32xf32>
    %307 = arith.truncf %306 : vector<16x32xf32> to vector<16x32xbf16>
    %c1_107 = arith.constant 1 : index
    %c0_108 = arith.constant 0 : index
    %c0_109 = arith.constant 0 : index
    %308 = vector.load %arg6[%c1_107, %c0_108, %c0_109] : memref<2x32x32xbf16, #tpu.memory_space<vmem>>, vector<1x32x32xbf16>
    %309 = vector.shape_cast %308 : vector<1x32x32xbf16> to vector<32x32xbf16>
    %cst_110 = arith.constant dense<0.000000e+00> : vector<16x32xf32>
    %310 = tpu.matmul %307, %309, %cst_110 {dimension_numbers = #tpu.dot_dimension_numbers<[1], [0], [0], [1], [0, 0, 1, 1], [], []>} : vector<16x32xbf16>, vector<32x32xbf16>, vector<16x32xf32> -> vector<16x32xf32>
    %c1_111 = arith.constant 1 : index
    %c0_112 = arith.constant 0 : index
    %c0_113 = arith.constant 0 : index
    %311 = vector.load %arg7[%c1_111, %c0_112, %c0_113] : memref<2x1x32xf32, #tpu.memory_space<vmem>>, vector<1x1x32xf32>
    %312 = vector.shape_cast %311 : vector<1x1x32xf32> to vector<1x32xf32>
    %313 = vector.broadcast %312 : vector<1x32xf32> to vector<16x32xf32>
    %314 = arith.addf %310, %313 : vector<16x32xf32>
    %315 = arith.addf %186, %314 : vector<16x32xf32>
    %c1_114 = arith.constant 1 : index
    %c0_115 = arith.constant 0 : index
    %c0_116 = arith.constant 0 : index
    %316 = vector.load %arg8[%c1_114, %c0_115, %c0_116] : memref<2x1x32xf32, #tpu.memory_space<vmem>>, vector<1x1x32xf32>
    %317 = vector.shape_cast %316 : vector<1x1x32xf32> to vector<1x32xf32>
    %c1_117 = arith.constant 1 : index
    %c0_118 = arith.constant 0 : index
    %c0_119 = arith.constant 0 : index
    %318 = vector.load %arg9[%c1_117, %c0_118, %c0_119] : memref<2x1x32xf32, #tpu.memory_space<vmem>>, vector<1x1x32xf32>
    %319 = vector.shape_cast %318 : vector<1x1x32xf32> to vector<1x32xf32>
    %cst_120 = arith.constant dense<0.000000e+00> : vector<16xf32>
    %320 = vector.multi_reduction <add>, %315, %cst_120 [1] : vector<16x32xf32> to vector<16xf32>
    %321 = vector.shape_cast %320 : vector<16xf32> to vector<16x1xf32>
    %cst_121 = arith.constant 3.200000e+01 : f32
    %322 = vector.broadcast %cst_121 : f32 to vector<16x1xf32>
    %323 = arith.divf %321, %322 : vector<16x1xf32>
    %324 = vector.broadcast %323 : vector<16x1xf32> to vector<16x32xf32>
    %325 = arith.subf %315, %324 : vector<16x32xf32>
    %326 = arith.mulf %325, %325 : vector<16x32xf32>
    %cst_122 = arith.constant dense<0.000000e+00> : vector<16xf32>
    %327 = vector.multi_reduction <add>, %326, %cst_122 [1] : vector<16x32xf32> to vector<16xf32>
    %328 = vector.shape_cast %327 : vector<16xf32> to vector<16x1xf32>
    %cst_123 = arith.constant 3.200000e+01 : f32
    %329 = vector.broadcast %cst_123 : f32 to vector<16x1xf32>
    %330 = arith.divf %328, %329 : vector<16x1xf32>
    %331 = vector.broadcast %323 : vector<16x1xf32> to vector<16x32xf32>
    %332 = arith.subf %315, %331 : vector<16x32xf32>
    %cst_124 = arith.constant 9.99999974E-6 : f32
    %333 = vector.broadcast %cst_124 : f32 to vector<16x1xf32>
    %334 = arith.addf %330, %333 : vector<16x1xf32>
    %335 = math.rsqrt %334 : vector<16x1xf32>
    %336 = vector.broadcast %335 : vector<16x1xf32> to vector<16x32xf32>
    %337 = arith.mulf %332, %336 : vector<16x32xf32>
    %338 = vector.broadcast %317 : vector<1x32xf32> to vector<16x32xf32>
    %339 = arith.mulf %337, %338 : vector<16x32xf32>
    %340 = vector.broadcast %319 : vector<1x32xf32> to vector<16x32xf32>
    %341 = arith.addf %339, %340 : vector<16x32xf32>
    %342 = arith.truncf %341 : vector<16x32xf32> to vector<16x32xbf16>
    %c1_125 = arith.constant 1 : index
    %c0_126 = arith.constant 0 : index
    %c0_127 = arith.constant 0 : index
    %343 = vector.load %arg10[%c1_125, %c0_126, %c0_127] : memref<2x32x128xbf16, #tpu.memory_space<vmem>>, vector<1x32x128xbf16>
    %344 = vector.shape_cast %343 : vector<1x32x128xbf16> to vector<32x128xbf16>
    %cst_128 = arith.constant dense<0.000000e+00> : vector<16x128xf32>
    %345 = tpu.matmul %342, %344, %cst_128 {dimension_numbers = #tpu.dot_dimension_numbers<[1], [0], [0], [1], [0, 0, 1, 1], [], []>} : vector<16x32xbf16>, vector<32x128xbf16>, vector<16x128xf32> -> vector<16x128xf32>
    %c1_129 = arith.constant 1 : index
    %c0_130 = arith.constant 0 : index
    %c0_131 = arith.constant 0 : index
    %346 = vector.load %arg11[%c1_129, %c0_130, %c0_131] : memref<2x1x128xf32, #tpu.memory_space<vmem>>, vector<1x1x128xf32>
    %347 = vector.shape_cast %346 : vector<1x1x128xf32> to vector<1x128xf32>
    %348 = vector.broadcast %347 : vector<1x128xf32> to vector<16x128xf32>
    %349 = arith.addf %345, %348 : vector<16x128xf32>
    %cst_132 = arith.constant 5.000000e-01 : f32
    %350 = vector.broadcast %cst_132 : f32 to vector<16x128xf32>
    %351 = arith.mulf %350, %349 : vector<16x128xf32>
    %cst_133 = arith.constant 4.471500e-02 : f32
    %352 = vector.broadcast %cst_133 : f32 to vector<16x128xf32>
    %353 = arith.mulf %352, %349 : vector<16x128xf32>
    %354 = arith.mulf %353, %349 : vector<16x128xf32>
    %355 = arith.mulf %354, %349 : vector<16x128xf32>
    %356 = arith.addf %349, %355 : vector<16x128xf32>
    %cst_134 = arith.constant 0.797884583 : f32
    %357 = vector.broadcast %cst_134 : f32 to vector<16x128xf32>
    %358 = arith.mulf %357, %356 : vector<16x128xf32>
    %359 = math.tanh %358 : vector<16x128xf32>
    %cst_135 = arith.constant 1.000000e+00 : f32
    %360 = vector.broadcast %cst_135 : f32 to vector<16x128xf32>
    %361 = arith.addf %360, %359 : vector<16x128xf32>
    %362 = arith.mulf %351, %361 : vector<16x128xf32>
    %363 = arith.truncf %362 : vector<16x128xf32> to vector<16x128xbf16>
    %c1_136 = arith.constant 1 : index
    %c0_137 = arith.constant 0 : index
    %c0_138 = arith.constant 0 : index
    %364 = vector.load %arg12[%c1_136, %c0_137, %c0_138] : memref<2x128x32xbf16, #tpu.memory_space<vmem>>, vector<1x128x32xbf16>
    %365 = vector.shape_cast %364 : vector<1x128x32xbf16> to vector<128x32xbf16>
    %cst_139 = arith.constant dense<0.000000e+00> : vector<16x32xf32>
    %366 = tpu.matmul %363, %365, %cst_139 {dimension_numbers = #tpu.dot_dimension_numbers<[1], [0], [0], [1], [0, 0, 1, 1], [], []>} : vector<16x128xbf16>, vector<128x32xbf16>, vector<16x32xf32> -> vector<16x32xf32>
    %c1_140 = arith.constant 1 : index
    %c0_141 = arith.constant 0 : index
    %c0_142 = arith.constant 0 : index
    %367 = vector.load %arg13[%c1_140, %c0_141, %c0_142] : memref<2x1x32xf32, #tpu.memory_space<vmem>>, vector<1x1x32xf32>
    %368 = vector.shape_cast %367 : vector<1x1x32xf32> to vector<1x32xf32>
    %369 = vector.broadcast %368 : vector<1x32xf32> to vector<16x32xf32>
    %370 = arith.addf %366, %369 : vector<16x32xf32>
    %371 = arith.addf %315, %370 : vector<16x32xf32>
    %c0_143 = arith.constant 0 : index
    %c0_144 = arith.constant 0 : index
    %372 = vector.load %arg14[%c0_143, %c0_144] : memref<1x32xf32, #tpu.memory_space<vmem>>, vector<1x32xf32>
    %c0_145 = arith.constant 0 : index
    %c0_146 = arith.constant 0 : index
    %373 = vector.load %arg15[%c0_145, %c0_146] : memref<1x32xf32, #tpu.memory_space<vmem>>, vector<1x32xf32>
    %cst_147 = arith.constant dense<0.000000e+00> : vector<16xf32>
    %374 = vector.multi_reduction <add>, %371, %cst_147 [1] : vector<16x32xf32> to vector<16xf32>
    %375 = vector.shape_cast %374 : vector<16xf32> to vector<16x1xf32>
    %cst_148 = arith.constant 3.200000e+01 : f32
    %376 = vector.broadcast %cst_148 : f32 to vector<16x1xf32>
    %377 = arith.divf %375, %376 : vector<16x1xf32>
    %378 = vector.broadcast %377 : vector<16x1xf32> to vector<16x32xf32>
    %379 = arith.subf %371, %378 : vector<16x32xf32>
    %380 = arith.mulf %379, %379 : vector<16x32xf32>
    %cst_149 = arith.constant dense<0.000000e+00> : vector<16xf32>
    %381 = vector.multi_reduction <add>, %380, %cst_149 [1] : vector<16x32xf32> to vector<16xf32>
    %382 = vector.shape_cast %381 : vector<16xf32> to vector<16x1xf32>
    %cst_150 = arith.constant 3.200000e+01 : f32
    %383 = vector.broadcast %cst_150 : f32 to vector<16x1xf32>
    %384 = arith.divf %382, %383 : vector<16x1xf32>
    %385 = vector.broadcast %377 : vector<16x1xf32> to vector<16x32xf32>
    %386 = arith.subf %371, %385 : vector<16x32xf32>
    %cst_151 = arith.constant 9.99999974E-6 : f32
    %387 = vector.broadcast %cst_151 : f32 to vector<16x1xf32>
    %388 = arith.addf %384, %387 : vector<16x1xf32>
    %389 = math.rsqrt %388 : vector<16x1xf32>
    %390 = vector.broadcast %389 : vector<16x1xf32> to vector<16x32xf32>
    %391 = arith.mulf %386, %390 : vector<16x32xf32>
    %392 = vector.broadcast %372 : vector<1x32xf32> to vector<16x32xf32>
    %393 = arith.mulf %391, %392 : vector<16x32xf32>
    %394 = vector.broadcast %373 : vector<1x32xf32> to vector<16x32xf32>
    %395 = arith.addf %393, %394 : vector<16x32xf32>
    %396 = arith.truncf %395 : vector<16x32xf32> to vector<16x32xbf16>
    %c0_152 = arith.constant 0 : index
    %c0_153 = arith.constant 0 : index
    %397 = vector.load %arg16[%c0_152, %c0_153] : memref<128x32xbf16, #tpu.memory_space<vmem>>, vector<128x32xbf16>
    "tpu.trace_start"() <{level = 10 : i32, message = "tc,vc->tv"}> : () -> ()
    %cst_154 = arith.constant dense<0.000000e+00> : vector<16x128xf32>
    %398 = tpu.matmul %396, %397, %cst_154 {dimension_numbers = #tpu.dot_dimension_numbers<[1], [1], [0], [0], [0, 0, 1, 0], [], []>} : vector<16x32xbf16>, vector<128x32xbf16>, vector<16x128xf32> -> vector<16x128xf32>
    "tpu.trace_stop"() : () -> ()
    %c0_155 = arith.constant 0 : index
    %c0_156 = arith.constant 0 : index
    %399 = vector.load %arg17[%c0_155, %c0_156] : memref<16x128xf32, #tpu.memory_space<vmem>>, vector<16x128xf32>
    tpu.vector_store %arg17[%c0_155, %c0_156], %398 {strides = array<i32>} : memref<16x128xf32, #tpu.memory_space<vmem>>, vector<16x128xf32>,
    return
  }
}

</mosaic_0001>

<bundles_post_ra>
// kernel: gpt_forward.1
= control target key start
LH: loop header
LB: loop body
LE: loop exit
PB: predicated region body
PF: predicated region fallthrough
CT: control target
= control target key end

     0   :  { %vm63_vm0 = vcmask 261120   ;;  %v2713_v14 = vmov 0.0   ;;  %vm2714_vm1 = vmmov 0   ;;  %s2715_s25 = smov 96   ;;  %s2717_s27 = smov 120   ;;  %vm182_vm2 = vcmask 64512   ;;  %s3330_s0 = inlined_call_operand.vmem [shape: f32[16,32], index: 0, kind: input, shape index: {}]   ;;  %s3331_s4 = inlined_call_operand.vmem [shape: bf16[2,32,96], index: 4, kind: input, shape index: {}]   ;;  %s3332_s2 = inlined_call_operand.vmem [shape: f32[2,1,32], index: 2, kind: input, shape index: {}]   ;;  %s3333_s3 = inlined_call_operand.vmem [shape: f32[2,1,32], index: 3, kind: input, shape index: {}]   ;;  %s3334_s5 = inlined_call_operand.vmem [shape: f32[2,1,96], index: 5, kind: input, shape index: {}]   ;;  %s3335_s1 = inlined_call_operand.vmem [shape: f32[16,16], index: 1, kind: input, shape index: {}]   ;;  %s3336_s6 = inlined_call_operand.vmem [shape: bf16[2,32,32], index: 6, kind: input, shape index: {}]   ;;  %s3337_s7 = inlined_call_operand.vmem [shape: f32[2,1,32], index: 7, kind: input, shape index: {}]   ;;  %s3338_s10 = inlined_call_operand.vmem [shape: bf16[2,32,128], index: 10, kind: input, shape index: {}]   ;;  %s3339_s8 = inlined_call_operand.vmem [shape: f32[2,1,32], index: 8, kind: input, shape index: {}]   ;;  %s3340_s9 = inlined_call_operand.vmem [shape: f32[2,1,32], index: 9, kind: input, shape index: {}]   ;;  %s3341_s12 = inlined_call_operand.vmem [shape: bf16[2,128,32], index: 12, kind: input, shape index: {}]   ;;  %s3342_s11 = inlined_call_operand.vmem [shape: f32[2,1,128], index: 11, kind: input, shape index: {}]   ;;  %s3343_s13 = inlined_call_operand.vmem [shape: f32[2,1,32], index: 13, kind: input, shape index: {}]   ;;  %s3344_s16 = inlined_call_operand.vmem [shape: bf16[128,32], index: 16, kind: input, shape index: {}]   ;;  %s3345_s14 = inlined_call_operand.vmem [shape: f32[1,32], index: 14, kind: input, shape index: {}]   ;;  %s3346_s15 = inlined_call_operand.vmem [shape: f32[1,32], index: 15, kind: input, shape index: {}]   ;;  %s3347_s17 = inlined_call_operand.vmem [shape: f32[16,128], index: 17, kind: output, shape index: {}]  }
   0x1   :  { %3358 = sst [smem:[#allocation2_spill]] %s3330_s0  ;;  %2333 = vmatprep.subr.bf16.mxu0 %v2713_v14  ;;  %2337 = vmatprep.mubr.msk.bf16.mxu0 %vm2714_vm1, %v2713_v14  ;;  %v2143_v25 = vld [vmem:[%s3332_s2] ss:$0 sm:$0xff]  ;;  %s2718_s28 = smov 80   ;;  %vm230_vm3 = vcmask 130048   ;;  %v2894_v55 = vld [vmem:[%s3335_s1 + $0x8] sm:$0xff] }
   0x2   :  { %3359 = sst [smem:[#allocation3_spill]] %s3331_s4  ;;  %2365 = vmatprep.subr.bf16.mxu1 %v2713_v14  ;;  %2367 = vmatprep.mubr.msk.bf16.mxu1 %vm2714_vm1, %v2713_v14  ;;  %v2144_v29 = vld [vmem:[%s3333_s3] ss:$0 sm:$0xff]  ;;  %s2719_s29 = smov 72   ;;  %vm693_vm4 = vcmask 195584  }
   0x3   :  { %s3360_s26 = sld [smem:[#allocation2_spill]]  ;;  %v2145_v35 = vld [vmem:[%s3334_s5] ss:$0 sm:$0xff]  ;;  %s2720_s20 = smov 64  }
   0x4   :  { %s3361_s30 = sld [smem:[#allocation3_spill]]  ;;  %v2888_v51 = vld [vmem:[%s3335_s1] sm:$0xff]  ;;  %s3357_s21 = smov 112  }
   0x5   :  { %s3356_s22 = smov 104   ;;  %s3355_s23 = smov 48  }
   0x6   :  { %s3350_s24 = smov 40   ;;  %s3351_s0 = smov 56  }
   0x7   :  { %s3354_s4 = smov 8   ;;  %s3353_s18 = smov 16  }
   0x8   :  { %s3352_s19 = smov 24  }
   0x9   :  { %v2822_v0 = vld [vmem:[%s3360_s26] sm:$0xff]  ;;  %v2827_v1 = vld [vmem:[%s3360_s26 + $0x8] sm:$0xff]  ;;  %s2716_s26 = smov 88  }
   0xa   :  { %v64_v2 = vsel %vm63_vm0, %v2822_v0, 0.0  ;;  %v67_v3 = vsel %vm63_vm0, %v2827_v1, 0.0  ;;  %v2583_v15 = vld [vmem:[%s3361_s30 + $0x8] sm:$0xff]   ;;  %v2584_v16 = vld [vmem:[%s3361_s30] sm:$0xff]  }
   0xb   :  { %65 = vadd.xlane.f32.xlu0 %v64_v2  ;;  %2334 = vmatpush3.bf16.msra.mxu0 %v2583_v15 }
   0xc   :  { %2335 = vmatprep.subr.bf16.mxu0 %v2713_v14 }
   0xf   :  { %68 = vadd.xlane.f32.xlu0 %v67_v3  ;;  %2336 = vmatpush3.bf16.msra.mxu0 %v2584_v16 }
  0x10   :  { %2341 = vmatprep.subr.bf16.mxu0 %v2713_v14 }
  0x94   :  { %v66_v4 = vpop.xlane.xlu0 %65 }
  0x95   :  { %v71_v5 = vmul.f32 0.03125, %v66_v4 }
  0x97   :  { %v73_v6 = vsub.f32 %v2822_v0, %v71_v5 }
  0x98   :  { %v69_v7 = vpop.xlane.xlu0 %68 }
  0x99   :  { %v72_v8 = vmul.f32 0.03125, %v69_v7  ;;  %v75_v9 = vmul.f32 %v73_v6, %v73_v6 }
  0x9b   :  { %v74_v10 = vsub.f32 %v2827_v1, %v72_v8  ;;  %v77_v11 = vsel %vm63_vm0, %v75_v9, 0.0 }
  0x9c   :  { %78 = vadd.xlane.f32.xlu1 %v77_v11 }
  0x9d   :  { %v76_v12 = vmul.f32 %v74_v10, %v74_v10 }
  0x9f   :  { %v80_v13 = vsel %vm63_vm0, %v76_v12, 0.0 }
  0xa0   :  { %81 = vadd.xlane.f32.xlu1 %v80_v13 }
 0x125   :  { %v79_v17 = vpop.xlane.xlu1 %78 }
 0x126   :  { %v83_v18 = vmul.f32 0.03125, %v79_v17 }
 0x128   :  { %v85_v19 = vadd.f32 1e-05, %v83_v18 }
 0x129   :  { %v82_v20 = vpop.xlane.xlu1 %81 }
 0x12a   :  { %2619 = vrsqrt.f32 %v85_v19  ;;  %v84_v21 = vmul.f32 0.03125, %v82_v20 }
 0x12c   :  { %v86_v22 = vadd.f32 1e-05, %v84_v21 }
 0x12e   :  { %2621 = vrsqrt.f32 %v86_v22 }
 0x137   :  { %v2620_v23 = vpop.eup %2619 }
 0x138   :  { %v89_v24 = vmul.f32 %v2620_v23, %v73_v6 }
 0x13a   :  { %v97_v28 = vmul.f32 %v2143_v25, %v89_v24 }
 0x13b   :  { %v2622_v26 = vpop.eup %2621 }
 0x13c   :  { %v90_v27 = vmul.f32 %v2622_v26, %v74_v10  ;;  %v105_v31 = vadd.f32 %v2144_v29, %v97_v28 }
 0x13e   :  { %v98_v30 = vmul.f32 %v2143_v25, %v90_v27 }
 0x140   :  { %v106_v32 = vadd.f32 %v2144_v29, %v98_v30 }
 0x142   :  { %v107_v33 = vpack.c.bf16 %v106_v32, %v105_v31 }
 0x144   :  { %2338 = vmatmul.mubr.msk.bf16.vlgmr.msra.gmra.mxu0 %vm63_vm0, %v107_v33 }
 0x145   :  { %2343 = vmatprep.mubr.msk.bf16.mxu0 %vm2714_vm1, %v2713_v14 }
 0x204   :  { %v168_v34 = vpop.f32.mrf.mxu0 }
 0x205   :  { %v169_v38 = vadd.f32 %v2145_v35, %v168_v34 }
 0x206   :  { %v2339_v36 = vpop.f32.mrf.mxu0 }
 0x207   :  { %v175_v43 = vmul.f32 0.35355338, %v169_v38 }
 0x208   :  { %v171_v37 = vpop.f32.mrf.mxu0 }
 0x209   :  { %v172_v39 = vadd.f32 %v2145_v35, %v171_v37 }
 0x20a   :  { %v2340_v40 = vpop.f32.mrf.mxu0 }
 0x20b   :  { %v2863_v41 = vpack.c.bf16 %v172_v39, %v169_v38  ;;  %v176_v42 = vmul.f32 0.35355338, %v172_v39 }
 0x20d   :  { %180 = vrot.lane.b32.xlu0 %v2863_v41, %s2715_s25  ;;  %v177_v44 = vpack.c.bf16 %v176_v42, %v175_v43 }
 0x211   :  { %304 = vrot.lane.b32.xlu0 %v2863_v41, %s2716_s26 }
 0x215   :  { %302 = vrot.lane.b32.xlu0 %v177_v44, %s2717_s27 }
 0x219   :  { %425 = vrot.lane.b32.xlu0 %v2863_v41, %s2718_s28 }
 0x21d   :  { %546 = vrot.lane.b32.xlu0 %v2863_v41, %s2719_s29 }
 0x27f   :  { %v181_v45 = vpop.permute.xlu0 %180 }
 0x280   :  { %v187_v46 = vsel %vm182_vm2, %v181_v45, 0 }
 0x281   :  { %2342 = vmatpush3.bf16.xpose.msra.mxu0 %v187_v46 }
 0x282   :  { %2347 = vmatprep.subr.bf16.mxu0 %v2713_v14 }
 0x283   :  { %v2876_v47 = vpop.permute.xlu0 %304 }
 0x284   :  { %v310_v22 = vsel %vm182_vm2, %v2876_v47, 0 }
 0x287   :  { %v2878_v48 = vpop.permute.xlu0 %302 }
 0x288   :  { %2344 = vmatmul.mubr.msk.bf16.vlgmr.msra.gmra.mxu0 %vm182_vm2, %v177_v44 }
 0x289   :  { %2349 = vmatprep.mubr.msk.bf16.mxu0 %vm2714_vm1, %v2713_v14 }
 0x28b   :  { %v426_v49 = vpop.permute.xlu0 %425 }
 0x28c   :  { %v431_v50 = vsel %vm182_vm2, %v426_v49, 0 }
 0x28d   :  { %2366 = vmatpush3.bf16.xpose.msra.mxu1 %v431_v50 }
 0x28e   :  { %2377 = vmatprep.subr.bf16.mxu1 %v2713_v14 }
 0x28f   :  { %v547_v12 = vpop.permute.xlu0 %546 }
 0x290   :  { %v552_v15 = vsel %vm182_vm2, %v547_v12, 0 }
 0x348   :  { %v223_v52 = vpop.f32.mrf.mxu0 }
 0x349   :  { %v224_v53 = vadd.f32 %v223_v52, %v2888_v51 }
 0x34a   :  { %v2345_v54 = vpop.f32.mrf.mxu0 }
 0x34b   :  { %v231_v56 = vsel %vm230_vm3, %v224_v53, -inf }
 0x34c   :  { %232 = vmax.xlane.f32.xlu1 %v231_v56  ;;  %v226_v57 = vpop.f32.mrf.mxu0 }
 0x34d   :  { %v227_v58 = vadd.f32 %v226_v57, %v2894_v55 }
 0x34e   :  { %v2346_v59 = vpop.f32.mrf.mxu0 }
 0x34f   :  { %v234_v60 = vsel %vm230_vm3, %v227_v58, -inf }
 0x350   :  { %235 = vmax.xlane.f32.xlu1 %v234_v60 }
 0x3d5   :  { %v233_v61 = vpop.xlane.xlu1 %232 }
 0x3d6   :  { %v237_v62 = vsub.f32 %v224_v53, %v233_v61 }
 0x3d8   :  { %v239_v63 = vmul.f32 1.442695, %v237_v62 }
 0x3d9   :  { %v236_v2 = vpop.xlane.xlu1 %235 }
 0x3da   :  { %2623 = vpow2.f32 %v239_v63  ;;  %v238_v3 = vsub.f32 %v227_v58, %v236_v2 }
 0x3dc   :  { %v241_v4 = vmul.f32 1.442695, %v238_v3 }
 0x3de   :  { %2625 = vpow2.f32 %v241_v4 }
 0x3e7   :  { %v2624_v5 = vpop.eup %2623 }
 0x3e8   :  { %v243_v6 = vsel %vm230_vm3, %v2624_v5, 0.0 }
 0x3e9   :  { %244 = vadd.xlane.f32.xlu1 %v243_v6 }
 0x3eb   :  { %v2626_v7 = vpop.eup %2625 }
 0x3ec   :  { %v246_v8 = vsel %vm230_vm3, %v2626_v7, 0.0 }
 0x3ed   :  { %247 = vadd.xlane.f32.xlu1 %v246_v8 }
 0x3fe   :  { %254 = vrot.lane.b32.xlu1 %v2863_v41, %s2720_s20 }
 0x402   :  { %423 = vrot.lane.b32.xlu1 %v177_v44, %s3357_s21  ;;  %s3368_s21 = smov 16  }
 0x406   :  { %544 = vrot.lane.b32.xlu1 %v177_v44, %s3356_s22  ;;  %s3367_s22 = smov 8  }
 0x472   :  { %v245_v9 = vpop.xlane.xlu1 %244 }
 0x473   :  { %2627 = vrcp.f32 %v245_v9 }
 0x476   :  { %v248_v10 = vpop.xlane.xlu1 %247 }
 0x477   :  { %2629 = vrcp.f32 %v248_v10 }
 0x47a   :  { %v255_v11 = vpop.permute.xlu1 %254 }
 0x47b   :  { %2348 = vmatpush3.bf16.msra.mxu0 %v255_v11 }
 0x47c   :  { %2353 = vmatprep.subr.bf16.mxu0 %v2713_v14 }
 0x47e   :  { %v424_v13 = vpop.permute.xlu1 %423 }
 0x47f   :  { %2368 = vmatmul.mubr.msk.bf16.vlgmr.msra.gmra.mxu1 %vm182_vm2, %v424_v13 }
 0x480   :  { %2378 = vmatpush3.bf16.xpose.msra.mxu1 %v552_v15  ;;  %2379 = vmatprep.mubr.msk.bf16.mxu1 %vm2714_vm1, %v2713_v14  ;;  %v2628_v16 = vpop.eup %2627 }
 0x481   :  { %2389 = vmatprep.subr.bf16.mxu1 %v2713_v14  ;;  %v251_v18 = vmul.f32 %v2628_v16, %v2624_v5 }
 0x482   :  { %v545_v20 = vpop.permute.xlu1 %544 }
 0x484   :  { %v2630_v17 = vpop.eup %2629 }
 0x485   :  { %v252_v19 = vmul.f32 %v2630_v17, %v2626_v7 }
 0x487   :  { %2380 = vmatmul.mubr.msk.bf16.vlgmr.msra.gmra.mxu1 %vm182_vm2, %v545_v20  ;;  %v253_v21 = vpack.c.bf16 %v252_v19, %v251_v18 }
 0x488   :  { %2393 = vmatprep.mubr.msk.bf16.mxu1 %vm2714_vm1, %v2713_v14 }
 0x489   :  { %2350 = vmatmul.mubr.msk.bf16.vlgmr.msra.gmra.mxu0 %vm230_vm3, %v253_v21 }
 0x48a   :  { %2354 = vmatpush3.bf16.xpose.msra.mxu0 %v310_v22  ;;  %2355 = vmatprep.mubr.msk.bf16.mxu0 %vm2714_vm1, %v2713_v14 }
 0x48b   :  { %2359 = vmatprep.subr.bf16.mxu0 %v2713_v14 }
 0x491   :  { %2356 = vmatmul.mubr.msk.bf16.vlgmr.msra.gmra.mxu0 %vm182_vm2, %v2878_v48 }
 0x492   :  { %2361 = vmatprep.mubr.msk.bf16.mxu0 %vm2714_vm1, %v2713_v14 }
 0x53f   :  { %v467_v23 = vpop.f32.mrf.mxu1 }
 0x540   :  { %v468_v38 = vadd.f32 %v467_v23, %v2888_v51 }
 0x541   :  { %v2369_v24 = vpop.f32.mrf.mxu1 }
 0x542   :  { %v474_v46 = vsel %vm230_vm3, %v468_v38, -inf }
 0x543   :  { %v470_v25 = vpop.f32.mrf.mxu1 }
 0x544   :  { %v471_v44 = vadd.f32 %v470_v25, %v2894_v55 }
 0x545   :  { %v2370_v26 = vpop.f32.mrf.mxu1 }
 0x546   :  { %v477_v49 = vsel %vm230_vm3, %v471_v44, -inf }
 0x547   :  { %v588_v27 = vpop.f32.mrf.mxu1 }
 0x548   :  { %v589_v48 = vadd.f32 %v588_v27, %v2888_v51 }
 0x549   :  { %v2924_v28 = vpop.f32.mrf.mxu0  ;;  %v2381_v29 = vpop.f32.mrf.mxu1 }
 0x54a   :  { %v595_v52 = vsel %vm230_vm3, %v589_v48, -inf }
 0x54b   :  { %v2351_v30 = vpop.f32.mrf.mxu0  ;;  %v591_v31 = vpop.f32.mrf.mxu1 }
 0x54c   :  { %v592_v45 = vadd.f32 %v591_v31, %v2894_v55 }
 0x54d   :  { %v2926_v32 = vpop.f32.mrf.mxu0  ;;  %v2382_v33 = vpop.f32.mrf.mxu1 }
 0x54e   :  { %v598_v50 = vsel %vm230_vm3, %v592_v45, -inf }
 0x54f   :  { %v2352_v34 = vpop.f32.mrf.mxu0 }
 0x551   :  { %v346_v35 = vpop.f32.mrf.mxu0 }
 0x552   :  { %v347_v36 = vadd.f32 %v346_v35, %v2888_v51 }
 0x553   :  { %v2357_v37 = vpop.f32.mrf.mxu0 }
 0x554   :  { %v353_v39 = vsel %vm230_vm3, %v347_v36, -inf }
 0x555   :  { %354 = vmax.xlane.f32.xlu0 %v353_v39  ;;  %v349_v40 = vpop.f32.mrf.mxu0 }
 0x556   :  { %v350_v42 = vadd.f32 %v349_v40, %v2894_v55 }
 0x557   :  { %v2358_v43 = vpop.f32.mrf.mxu0 }
 0x558   :  { %v356_v47 = vsel %vm230_vm3, %v350_v42, -inf }
 0x559   :  { %475 = vmax.xlane.f32.xlu0 %v474_v46  ;;  %357 = vmax.xlane.f32.xlu1 %v356_v47 }
 0x55d   :  { %478 = vmax.xlane.f32.xlu0 %v477_v49  ;;  %599 = vmax.xlane.f32.xlu1 %v598_v50 }
 0x561   :  { %596 = vmax.xlane.f32.xlu0 %v595_v52 }
 0x5de   :  { %v355_v53 = vpop.xlane.xlu0 %354 }
 0x5df   :  { %v359_v63 = vsub.f32 %v347_v36, %v355_v53 }
 0x5e1   :  { %v361_v7 = vmul.f32 1.442695, %v359_v63 }
 0x5e2   :  { %v476_v54 = vpop.xlane.xlu0 %475  ;;  %v358_v56 = vpop.xlane.xlu1 %357 }
 0x5e3   :  { %v480_v57 = vsub.f32 %v468_v38, %v476_v54  ;;  %v360_v2 = vsub.f32 %v350_v42, %v358_v56  ;;  %v2585_v54 = vld [vmem:[%s3336_s6 + $0x8] sm:$0xff]  }
 0x5e4   :  { %2390 = vmatpush3.bf16.msra.mxu1 %v2585_v54 }
 0x5e5   :  { %v482_v58 = vmul.f32 1.442695, %v480_v57  ;;  %v363_v8 = vmul.f32 1.442695, %v360_v2  ;;  %2391 = vmatprep.subr.bf16.mxu1 %v2713_v14 }
 0x5e6   :  { %v479_v59 = vpop.xlane.xlu0 %478  ;;  %v600_v60 = vpop.xlane.xlu1 %599 }
 0x5e7   :  { %2631 = vpow2.f32 %v482_v58  ;;  %v481_v61 = vsub.f32 %v471_v44, %v479_v59  ;;  %v602_v62 = vsub.f32 %v592_v45, %v600_v60  ;;  %v2586_v59 = vld [vmem:[%s3336_s6] sm:$0xff]  }
 0x5e8   :  { %2392 = vmatpush3.bf16.msra.mxu1 %v2586_v59 }
 0x5e9   :  { %v484_v3 = vmul.f32 1.442695, %v481_v61  ;;  %v605_v4 = vmul.f32 1.442695, %v602_v62  ;;  %2405 = vmatprep.subr.bf16.mxu1 %v2713_v14 }
 0x5ea   :  { %v597_v5 = vpop.xlane.xlu0 %596 }
 0x5eb   :  { %2633 = vpow2.f32 %v484_v3  ;;  %v601_v6 = vsub.f32 %v589_v48, %v597_v5 }
 0x5ec   :  { %2635 = vpow2.f32 %v605_v4 }
 0x5ed   :  { %v603_v9 = vmul.f32 1.442695, %v601_v6 }
 0x5ef   :  { %2637 = vpow2.f32 %v603_v9 }
 0x5f0   :  { %2639 = vpow2.f32 %v361_v7 }
 0x5f1   :  { %2641 = vpow2.f32 %v363_v8 }
 0x5f4   :  { %v2632_v10 = vpop.eup %2631 }
 0x5f5   :  { %v486_v11 = vsel %vm230_vm3, %v2632_v10, 0.0 }
 0x5f6   :  { %487 = vadd.xlane.f32.xlu0 %v486_v11 }
 0x5f8   :  { %v2634_v12 = vpop.eup %2633 }
 0x5f9   :  { %v489_v13 = vsel %vm230_vm3, %v2634_v12, 0.0  ;;  %v2636_v15 = vpop.eup %2635 }
 0x5fa   :  { %490 = vadd.xlane.f32.xlu1 %v489_v13  ;;  %v610_v19 = vsel %vm230_vm3, %v2636_v15, 0.0 }
 0x5fc   :  { %v2638_v16 = vpop.eup %2637 }
 0x5fd   :  { %v2640_v17 = vpop.eup %2639  ;;  %v607_v18 = vsel %vm230_vm3, %v2638_v16, 0.0 }
 0x5fe   :  { %v2642_v20 = vpop.eup %2641  ;;  %608 = vadd.xlane.f32.xlu0 %v607_v18  ;;  %611 = vadd.xlane.f32.xlu1 %v610_v19  ;;  %v365_v21 = vsel %vm230_vm3, %v2640_v17, 0.0 }
 0x5ff   :  { %v368_v22 = vsel %vm230_vm3, %v2642_v20, 0.0 }
 0x602   :  { %366 = vadd.xlane.f32.xlu0 %v365_v21  ;;  %369 = vadd.xlane.f32.xlu1 %v368_v22 }
 0x613   :  { %497 = vrot.lane.b32.xlu1 %v2863_v41, %s3355_s23 }
 0x617   :  { %618 = vrot.lane.b32.xlu1 %v2863_v41, %s3350_s24 }
 0x618   :  { %376 = vrot.lane.b32.xlu0 %v2863_v41, %s3351_s0 }
 0x67f   :  { %v488_v23 = vpop.xlane.xlu0 %487 }
 0x683   :  { %v491_v24 = vpop.xlane.xlu1 %490 }
 0x687   :  { %v609_v25 = vpop.xlane.xlu0 %608  ;;  %v612_v26 = vpop.xlane.xlu1 %611 }
 0x68b   :  { %v367_v27 = vpop.xlane.xlu0 %366  ;;  %v370_v29 = vpop.xlane.xlu1 %369 }
 0x68c   :  { %2643 = vrcp.f32 %v367_v27 }
 0x68d   :  { %2645 = vrcp.f32 %v370_v29 }
 0x68e   :  { %2647 = vrcp.f32 %v491_v24 }
 0x68f   :  { %v377_v30 = vpop.permute.xlu0 %376  ;;  %2649 = vrcp.f32 %v488_v23  ;;  %v498_v37 = vpop.permute.xlu1 %497 }
 0x690   :  { %2360 = vmatpush3.bf16.msra.mxu0 %v377_v30  ;;  %2651 = vrcp.f32 %v609_v25 }
 0x691   :  { %2371 = vmatprep.subr.bf16.mxu0 %v2713_v14  ;;  %2653 = vrcp.f32 %v612_v26 }
 0x693   :  { %v619_v45 = vpop.permute.xlu1 %618 }
 0x699   :  { %v2644_v31 = vpop.eup %2643 }
 0x69a   :  { %v2646_v33 = vpop.eup %2645  ;;  %v373_v34 = vmul.f32 %v2644_v31, %v2640_v17 }
 0x69b   :  { %v374_v41 = vmul.f32 %v2646_v33, %v2642_v20  ;;  %v2648_v36 = vpop.eup %2647 }
 0x69c   :  { %v2650_v38 = vpop.eup %2649  ;;  %v495_v39 = vmul.f32 %v2648_v36, %v2634_v12 }
 0x69d   :  { %v375_v35 = vpack.c.bf16 %v374_v41, %v373_v34  ;;  %v494_v40 = vmul.f32 %v2650_v38, %v2632_v10  ;;  %v2652_v42 = vpop.eup %2651 }
 0x69e   :  { %v2654_v44 = vpop.eup %2653  ;;  %v615_v46 = vmul.f32 %v2652_v42, %v2638_v16  ;;  %v2587_v42 = vld [vmem:[%s3338_s10 + $0x8] sm:$0xff]  }
 0x69f   :  { %2362 = vmatmul.mubr.msk.bf16.vlgmr.msra.gmra.mxu0 %vm230_vm3, %v375_v35  ;;  %v496_v43 = vpack.c.bf16 %v495_v39, %v494_v40  ;;  %v616_v47 = vmul.f32 %v2654_v44, %v2636_v15 }
 0x6a0   :  { %2372 = vmatpush3.bf16.msra.mxu0 %v498_v37  ;;  %2373 = vmatprep.mubr.msk.bf16.mxu0 %vm2714_vm1, %v2713_v14 }
 0x6a1   :  { %2383 = vmatprep.subr.bf16.mxu0 %v2713_v14  ;;  %v617_v48 = vpack.c.bf16 %v616_v47, %v615_v46 }
 0x6a7   :  { %2374 = vmatmul.mubr.msk.bf16.vlgmr.msra.gmra.mxu0 %vm230_vm3, %v496_v43  ;;  %v2588_v43 = vld [vmem:[%s3338_s10] sm:$0xff]  }
 0x6a8   :  { %2384 = vmatpush3.bf16.msra.mxu0 %v619_v45  ;;  %2385 = vmatprep.mubr.msk.bf16.mxu0 %vm2714_vm1, %v2713_v14 }
 0x6a9   :  { %2397 = vmatprep.subr.bf16.mxu0 %v2713_v14 }
 0x6af   :  { %2386 = vmatmul.mubr.msk.bf16.vlgmr.msra.gmra.mxu0 %vm230_vm3, %v617_v48 }
 0x6b0   :  { %2401 = vmatprep.mubr.msk.bf16.mxu0 %vm2714_vm1, %v2713_v14  ;;  %2398 = vmatpush3.bf16.msra.mxu0 %v2587_v42 }
 0x6b1   :  { %2399 = vmatprep.subr.bf16.mxu0 %v2713_v14 }
 0x6b4   :  { %2400 = vmatpush3.bf16.msra.mxu0 %v2588_v43 }
 0x6b5   :  { %2425 = vmatprep.subr.bf16.mxu0 %v2713_v14 }
 0x75f   :  { %v416_v49 = vpop.f32.mrf.mxu0 }
 0x761   :  { %v2363_v50 = vpop.f32.mrf.mxu0 }
 0x763   :  { %v419_v52 = vpop.f32.mrf.mxu0 }
 0x764   :  { %v2553_v53 = vpack.i.bf16 %v419_v52, %v416_v49 }
 0x765   :  { %v2364_v56 = vpop.f32.mrf.mxu0 }
 0x766   :  { %2554 = vrot.lane.b32.xlu1 %v2553_v53, %s3354_s4  ;;  %v2161_v53 = vld [vmem:[%s3339_s8] ss:$0 sm:$0xff] }
 0x767   :  { %v537_v57 = vpop.f32.mrf.mxu0 }
 0x769   :  { %v2375_v58 = vpop.f32.mrf.mxu0 }
 0x76a   :  { %v2162_v58 = vld [vmem:[%s3340_s9] ss:$0 sm:$0xff] }
 0x76b   :  { %v540_v60 = vpop.f32.mrf.mxu0 }
 0x76c   :  { %v2558_v61 = vpack.i.bf16 %v540_v60, %v537_v57 }
 0x76d   :  { %v2376_v62 = vpop.f32.mrf.mxu0 }
 0x76e   :  { %2559 = vrot.lane.b32.xlu0 %v2558_v61, %s3353_s18 }
 0x76f   :  { %v658_v63 = vpop.f32.mrf.mxu0 }
 0x771   :  { %v2387_v2 = vpop.f32.mrf.mxu0 }
 0x772   :  { %v2590_v2 = vld [vmem:[%s3341_s12 + $0x30] sm:$0xff]  }
 0x773   :  { %v661_v3 = vpop.f32.mrf.mxu0 }
 0x774   :  { %v2563_v4 = vpack.i.bf16 %v661_v3, %v658_v63  ;;  %v2589_v63 = vld [vmem:[%s3341_s12 + $0x38] sm:$0xff]   ;;  %v2591_v3 = vld [vmem:[%s3341_s12 + $0x28] sm:$0xff]  }
 0x775   :  { %v2388_v5 = vpop.f32.mrf.mxu0 }
 0x776   :  { %2564 = vrot.lane.b32.xlu1 %v2563_v4, %s3352_s19  ;;  %v2592_v4 = vld [vmem:[%s3341_s12 + $0x20] sm:$0xff]   ;;  %v2593_v5 = vld [vmem:[%s3341_s12 + $0x18] sm:$0xff]  }
 0x7d8   :  { %v2555_v6 = vpop.permute.xlu1 %2554 }
 0x7d9   :  { %v2557_v8 = vunpack.i.h.bf16 %v2555_v6  ;;  %v2556_v9 = vunpack.i.l.bf16 %v2555_v6  ;;  %v2594_v6 = vld [vmem:[%s3341_s12 + $0x10] sm:$0xff]  }
 0x7db   :  { %v690_v13 = vsel %vm182_vm2, %v2926_v32, %v2557_v8  ;;  %v689_v15 = vsel %vm182_vm2, %v2924_v28, %v2556_v9  ;;  %v2157_v28 = vld [vmem:[%s3337_s7] ss:$0 sm:$0xff] }
 0x7dc   :  { %v2596_v8 = vld [vmem:[%s3341_s12] sm:$0xff]  }
 0x7dd   :  { %v2163_v9 = vld [vmem:[%s3342_s11] ss:$0 sm:$0xff] }
 0x7e0   :  { %v2560_v7 = vpop.permute.xlu0 %2559 }
 0x7e1   :  { %v2562_v10 = vunpack.i.h.bf16 %v2560_v7  ;;  %v2561_v11 = vunpack.i.l.bf16 %v2560_v7  ;;  %v2595_v7 = vld [vmem:[%s3341_s12 + $0x8] sm:$0xff]  }
 0x7e3   :  { %v692_v18 = vsel %vm230_vm3, %v690_v13, %v2562_v10  ;;  %v691_v19 = vsel %vm230_vm3, %v689_v15, %v2561_v11 }
 0x7e8   :  { %v2565_v12 = vpop.permute.xlu1 %2564 }
 0x7e9   :  { %v2567_v16 = vunpack.i.h.bf16 %v2565_v12  ;;  %v2566_v17 = vunpack.i.l.bf16 %v2565_v12 }
 0x7eb   :  { %v695_v20 = vsel %vm693_vm4, %v692_v18, %v2567_v16  ;;  %v694_v21 = vsel %vm693_vm4, %v691_v19, %v2566_v17 }
 0x7ec   :  { %v696_v22 = vpack.c.bf16 %v695_v20, %v694_v21 }
 0x7ee   :  { %2394 = vmatmul.mubr.msk.bf16.vlgmr.msra.gmra.mxu1 %vm63_vm0, %v696_v22 }
 0x7ef   :  { %2421 = vmatprep.mubr.msk.bf16.mxu1 %vm2714_vm1, %v2713_v14  ;;  %2406 = vmatpush3.bf16.msra.mxu1 %v2589_v63 }
 0x7f0   :  { %2407 = vmatprep.subr.bf16.mxu1 %v2713_v14 }
 0x7f3   :  { %2408 = vmatpush3.bf16.msra.mxu1 %v2590_v2 }
 0x7f4   :  { %2409 = vmatprep.subr.bf16.mxu1 %v2713_v14 }
 0x7f7   :  { %2410 = vmatpush3.bf16.msra.mxu1 %v2591_v3 }
 0x7f8   :  { %2411 = vmatprep.subr.bf16.mxu1 %v2713_v14 }
 0x7fb   :  { %2412 = vmatpush3.bf16.msra.mxu1 %v2592_v4  ;;  %v2178_v4 = vld [vmem:[%s3332_s2 + $0x1] ss:$0 sm:$0xff] }
 0x7fc   :  { %2413 = vmatprep.subr.bf16.mxu1 %v2713_v14 }
 0x7ff   :  { %2414 = vmatpush3.bf16.msra.mxu1 %v2593_v5 }
 0x800   :  { %2415 = vmatprep.subr.bf16.mxu1 %v2713_v14 }
 0x803   :  { %2416 = vmatpush3.bf16.msra.mxu1 %v2594_v6  ;;  %v2179_v6 = vld [vmem:[%s3333_s3 + $0x1] ss:$0 sm:$0xff]  ;;  %s3362_s3 = smov 112  }
 0x804   :  { %2417 = vmatprep.subr.bf16.mxu1 %v2713_v14 }
 0x807   :  { %2418 = vmatpush3.bf16.msra.mxu1 %v2595_v7 }
 0x808   :  { %2419 = vmatprep.subr.bf16.mxu1 %v2713_v14 }
 0x80b   :  { %2420 = vmatpush3.bf16.msra.mxu1 %v2596_v8 }
 0x80c   :  { %2451 = vmatprep.subr.bf16.mxu1 %v2713_v14 }
 0x8ae   :  { %v757_v32 = vpop.f32.mrf.mxu1 }
 0x8af   :  { %v758_v23 = vadd.f32 %v2157_v28, %v757_v32 }
 0x8b0   :  { %v2395_v24 = vpop.f32.mrf.mxu1 }
 0x8b1   :  { %v2990_v25 = vadd.f32 %v758_v23, %v2822_v0 }
 0x8b2   :  { %v760_v26 = vpop.f32.mrf.mxu1 }
 0x8b3   :  { %v761_v27 = vadd.f32 %v2157_v28, %v760_v26  ;;  %v768_v29 = vsel %vm63_vm0, %v2990_v25, 0.0 }
 0x8b4   :  { %769 = vadd.xlane.f32.xlu0 %v768_v29  ;;  %v2396_v30 = vpop.f32.mrf.mxu1 }
 0x8b5   :  { %v2995_v31 = vadd.f32 %v761_v27, %v2827_v1 }
 0x8b7   :  { %v771_v33 = vsel %vm63_vm0, %v2995_v31, 0.0 }
 0x8b8   :  { %772 = vadd.xlane.f32.xlu1 %v771_v33 }
 0x93d   :  { %v770_v34 = vpop.xlane.xlu0 %769 }
 0x93e   :  { %v774_v41 = vmul.f32 0.03125, %v770_v34 }
 0x940   :  { %v776_v35 = vsub.f32 %v2990_v25, %v774_v41 }
 0x941   :  { %v773_v0 = vpop.xlane.xlu1 %772 }
 0x942   :  { %v775_v36 = vmul.f32 0.03125, %v773_v0  ;;  %v778_v37 = vmul.f32 %v776_v35, %v776_v35 }
 0x944   :  { %v777_v38 = vsub.f32 %v2995_v31, %v775_v36  ;;  %v780_v39 = vsel %vm63_vm0, %v778_v37, 0.0  ;;  %v2167_v36 = vld [vmem:[%s3343_s13] ss:$0 sm:$0xff] }
 0x945   :  { %781 = vadd.xlane.f32.xlu0 %v780_v39 }
 0x946   :  { %v779_v40 = vmul.f32 %v777_v38, %v777_v38 }
 0x948   :  { %v783_v1 = vsel %vm63_vm0, %v779_v40, 0.0 }
 0x949   :  { %784 = vadd.xlane.f32.xlu0 %v783_v1 }
 0x9ce   :  { %v782_v44 = vpop.xlane.xlu0 %781 }
 0x9cf   :  { %v786_v45 = vmul.f32 0.03125, %v782_v44 }
 0x9d1   :  { %v788_v46 = vadd.f32 1e-05, %v786_v45 }
 0x9d2   :  { %v785_v47 = vpop.xlane.xlu0 %784 }
 0x9d3   :  { %2655 = vrsqrt.f32 %v788_v46  ;;  %v787_v48 = vmul.f32 0.03125, %v785_v47 }
 0x9d5   :  { %v789_v49 = vadd.f32 1e-05, %v787_v48 }
 0x9d7   :  { %2657 = vrsqrt.f32 %v789_v49 }
 0x9e0   :  { %v2656_v50 = vpop.eup %2655 }
 0x9e1   :  { %v792_v52 = vmul.f32 %v2656_v50, %v776_v35 }
 0x9e3   :  { %v800_v57 = vmul.f32 %v2161_v53, %v792_v52 }
 0x9e4   :  { %v2658_v54 = vpop.eup %2657 }
 0x9e5   :  { %v793_v56 = vmul.f32 %v2658_v54, %v777_v38  ;;  %v808_v60 = vadd.f32 %v2162_v58, %v800_v57  ;;  %v2597_v57 = vld [vmem:[%s3361_s30 + $0x18] sm:$0xff]  }
 0x9e7   :  { %v801_v59 = vmul.f32 %v2161_v53, %v793_v56 }
 0x9e9   :  { %v809_v61 = vadd.f32 %v2162_v58, %v801_v59  ;;  %v2598_v58 = vld [vmem:[%s3361_s30 + $0x10] sm:$0xff]   ;;  %s3369_s30 = smov 24  }
 0x9eb   :  { %v810_v62 = vpack.c.bf16 %v809_v61, %v808_v60 }
 0x9ed   :  { %2402 = vmatmul.mubr.msk.bf16.vlgmr.msra.gmra.mxu0 %vm63_vm0, %v810_v62 }
 0x9ee   :  { %2429 = vmatprep.mubr.msk.bf16.mxu0 %vm2714_vm1, %v2713_v14  ;;  %2426 = vmatpush3.bf16.msra.mxu0 %v2597_v57 }
 0x9ef   :  { %2427 = vmatprep.subr.bf16.mxu0 %v2713_v14 }
 0x9f2   :  { %2428 = vmatpush3.bf16.msra.mxu0 %v2598_v58 }
 0x9f3   :  { %2433 = vmatprep.subr.bf16.mxu0 %v2713_v14 }
 0xaad   :  { %v871_v10 = vpop.f32.mrf.mxu0 }
 0xaae   :  { %v872_v11 = vadd.f32 %v2163_v9, %v871_v10 }
 0xaaf   :  { %v2403_v12 = vpop.f32.mrf.mxu0 }
 0xab0   :  { %v880_v13 = vmul.f32 0.044715, %v872_v11  ;;  %v878_v30 = vmul.f32 0.5, %v872_v11 }
 0xab1   :  { %v874_v15 = vpop.f32.mrf.mxu0 }
 0xab2   :  { %v882_v16 = vmul.f32 %v880_v13, %v872_v11  ;;  %v875_v17 = vadd.f32 %v2163_v9, %v874_v15 }
 0xab3   :  { %v2404_v18 = vpop.f32.mrf.mxu0 }
 0xab4   :  { %v884_v19 = vmul.f32 %v882_v16, %v872_v11  ;;  %v881_v20 = vmul.f32 0.044715, %v875_v17  ;;  %v879_v33 = vmul.f32 0.5, %v875_v17  ;;  %v2185_v16 = vld [vmem:[%s3334_s5 + $0x1] ss:$0 sm:$0xff]  ;;  %s3363_s5 = smov 104  }
 0xab6   :  { %v886_v21 = vadd.f32 %v884_v19, %v872_v11  ;;  %v883_v22 = vmul.f32 %v881_v20, %v875_v17 }
 0xab8   :  { %v888_v28 = vmul.f32 0.7978846, %v886_v21  ;;  %v885_v32 = vmul.f32 %v883_v22, %v875_v17 }
 0xaba   :  { %2659 = vtanh.f32 %v888_v28  ;;  %v887_v23 = vadd.f32 %v885_v32, %v875_v17 }
 0xabc   :  { %v889_v24 = vmul.f32 0.7978846, %v887_v23 }
 0xabe   :  { %2661 = vtanh.f32 %v889_v24 }
 0xac7   :  { %v2660_v26 = vpop.eup %2659 }
 0xac8   :  { %v892_v27 = vadd.f32 1.0, %v2660_v26 }
 0xaca   :  { %v894_v41 = vmul.f32 %v892_v27, %v878_v30 }
 0xacb   :  { %v2662_v29 = vpop.eup %2661 }
 0xacc   :  { %v893_v34 = vadd.f32 1.0, %v2662_v29 }
 0xace   :  { %v895_v35 = vmul.f32 %v893_v34, %v879_v33 }
 0xad0   :  { %v896_v0 = vpack.c.bf16 %v895_v35, %v894_v41 }
 0xad2   :  { %2422 = vmatmul.mubr.bf16.vlgmr.msra.gmra.mxu1 %v896_v0 }
 0xad3   :  { %2453 = vmatprep.mubr.msk.bf16.mxu1 %vm2714_vm1, %v2713_v14 }
 0xb92   :  { %v1002_v37 = vpop.f32.mrf.mxu1 }
 0xb93   :  { %v1003_v38 = vadd.f32 %v2167_v36, %v1002_v37 }
 0xb94   :  { %v2423_v39 = vpop.f32.mrf.mxu1 }
 0xb95   :  { %v3061_v40 = vadd.f32 %v1003_v38, %v2990_v25 }
 0xb96   :  { %v1005_v1 = vpop.f32.mrf.mxu1 }
 0xb97   :  { %v1006_v42 = vadd.f32 %v2167_v36, %v1005_v1  ;;  %v1015_v43 = vsel %vm63_vm0, %v3061_v40, 0.0 }
 0xb98   :  { %1016 = vadd.xlane.f32.xlu0 %v1015_v43  ;;  %v2424_v44 = vpop.f32.mrf.mxu1 }
 0xb99   :  { %v3066_v45 = vadd.f32 %v1006_v42, %v2995_v31 }
 0xb9b   :  { %v1018_v46 = vsel %vm63_vm0, %v3066_v45, 0.0 }
 0xb9c   :  { %1019 = vadd.xlane.f32.xlu1 %v1018_v46 }
 0xc21   :  { %v1017_v47 = vpop.xlane.xlu0 %1016 }
 0xc22   :  { %v1021_v48 = vmul.f32 0.03125, %v1017_v47 }
 0xc24   :  { %v1023_v49 = vsub.f32 %v3061_v40, %v1021_v48 }
 0xc25   :  { %v1020_v25 = vpop.xlane.xlu1 %1019 }
 0xc26   :  { %v1022_v50 = vmul.f32 0.03125, %v1020_v25  ;;  %v1025_v52 = vmul.f32 %v1023_v49, %v1023_v49 }
 0xc28   :  { %v1024_v53 = vsub.f32 %v3066_v45, %v1022_v50  ;;  %v1027_v54 = vsel %vm63_vm0, %v1025_v52, 0.0 }
 0xc29   :  { %1028 = vadd.xlane.f32.xlu0 %v1027_v54 }
 0xc2a   :  { %v1026_v56 = vmul.f32 %v1024_v53, %v1024_v53 }
 0xc2c   :  { %v1030_v31 = vsel %vm63_vm0, %v1026_v56, 0.0 }
 0xc2d   :  { %1031 = vadd.xlane.f32.xlu1 %v1030_v31 }
 0xcb2   :  { %v1029_v59 = vpop.xlane.xlu0 %1028 }
 0xcb3   :  { %v1033_v60 = vmul.f32 0.03125, %v1029_v59 }
 0xcb5   :  { %v1035_v61 = vadd.f32 1e-05, %v1033_v60 }
 0xcb6   :  { %v1032_v62 = vpop.xlane.xlu1 %1031 }
 0xcb7   :  { %2663 = vrsqrt.f32 %v1035_v61  ;;  %v1034_v63 = vmul.f32 0.03125, %v1032_v62 }
 0xcb9   :  { %v1036_v2 = vadd.f32 1e-05, %v1034_v63 }
 0xcbb   :  { %2665 = vrsqrt.f32 %v1036_v2 }
 0xcc4   :  { %v2664_v3 = vpop.eup %2663 }
 0xcc5   :  { %v1039_v5 = vmul.f32 %v2664_v3, %v1023_v49 }
 0xcc7   :  { %v1047_v7 = vmul.f32 %v2178_v4, %v1039_v5 }
 0xcc8   :  { %v2666_v8 = vpop.eup %2665 }
 0xcc9   :  { %v1040_v9 = vmul.f32 %v2666_v8, %v1024_v53  ;;  %v1055_v10 = vadd.f32 %v2179_v6, %v1047_v7 }
 0xccb   :  { %v1048_v11 = vmul.f32 %v2178_v4, %v1040_v9 }
 0xccd   :  { %v1056_v12 = vadd.f32 %v2179_v6, %v1048_v11  ;;  %v2711_v6 = vld [vmem:[%s3335_s1] sm:$0xff]  ;;  %v2712_v11 = vld [vmem:[%s3335_s1 + $0x8] sm:$0xff]  ;;  %s3364_s1 = smov 48  }
 0xccf   :  { %v1057_v13 = vpack.c.bf16 %v1056_v12, %v1055_v10 }
 0xcd1   :  { %2430 = vmatmul.mubr.msk.bf16.vlgmr.msra.gmra.mxu0 %vm63_vm0, %v1057_v13 }
 0xcd2   :  { %2435 = vmatprep.mubr.msk.bf16.mxu0 %vm2714_vm1, %v2713_v14 }
 0xd91   :  { %v1120_v15 = vpop.f32.mrf.mxu0 }
 0xd92   :  { %v1121_v19 = vadd.f32 %v2185_v16, %v1120_v15 }
 0xd93   :  { %v2431_v17 = vpop.f32.mrf.mxu0 }
 0xd94   :  { %v1127_v32 = vmul.f32 0.35355338, %v1121_v19 }
 0xd95   :  { %v1123_v18 = vpop.f32.mrf.mxu0 }
 0xd96   :  { %v1124_v20 = vadd.f32 %v2185_v16, %v1123_v18 }
 0xd97   :  { %v2432_v21 = vpop.f32.mrf.mxu0 }
 0xd98   :  { %v3094_v22 = vpack.c.bf16 %v1124_v20, %v1121_v19  ;;  %v1128_v28 = vmul.f32 0.35355338, %v1124_v20 }
 0xd9a   :  { %1132 = vrot.lane.b32.xlu0 %v3094_v22, %s2715_s25  ;;  %v1129_v23 = vpack.c.bf16 %v1128_v28, %v1127_v32 }
 0xd9e   :  { %1254 = vrot.lane.b32.xlu0 %v3094_v22, %s2716_s26 }
 0xda2   :  { %1252 = vrot.lane.b32.xlu0 %v1129_v23, %s2717_s27 }
 0xda6   :  { %1375 = vrot.lane.b32.xlu0 %v3094_v22, %s2718_s28 }
 0xdaa   :  { %1496 = vrot.lane.b32.xlu0 %v3094_v22, %s2719_s29  ;;  %s3365_s29 = smov 56  }
 0xe0c   :  { %v1133_v24 = vpop.permute.xlu0 %1132 }
 0xe0d   :  { %v1138_v26 = vsel %vm182_vm2, %v1133_v24, 0 }
 0xe0e   :  { %2434 = vmatpush3.bf16.xpose.msra.mxu0 %v1138_v26 }
 0xe0f   :  { %2439 = vmatprep.subr.bf16.mxu0 %v2713_v14 }
 0xe10   :  { %v1255_v25 = vpop.permute.xlu0 %1254 }
 0xe11   :  { %v1260_v31 = vsel %vm182_vm2, %v1255_v25, 0 }
 0xe14   :  { %v1253_v56 = vpop.permute.xlu0 %1252 }
 0xe15   :  { %2436 = vmatmul.mubr.msk.bf16.vlgmr.msra.gmra.mxu0 %vm182_vm2, %v1129_v23 }
 0xe16   :  { %2441 = vmatprep.mubr.msk.bf16.mxu0 %vm2714_vm1, %v2713_v14 }
 0xe18   :  { %v1376_v57 = vpop.permute.xlu0 %1375 }
 0xe19   :  { %v1381_v58 = vsel %vm182_vm2, %v1376_v57, 0 }
 0xe1c   :  { %v1497_v59 = vpop.permute.xlu0 %1496 }
 0xe1d   :  { %v1502_v61 = vsel %vm182_vm2, %v1497_v59, 0 }
 0xed5   :  { %v1174_v27 = vpop.f32.mrf.mxu0 }
 0xed6   :  { %v1175_v29 = vadd.f32 %v1174_v27, %v2888_v51 }
 0xed7   :  { %v2437_v30 = vpop.f32.mrf.mxu0 }
 0xed8   :  { %v1181_v33 = vsel %vm230_vm3, %v1175_v29, -inf }
 0xed9   :  { %1182 = vmax.xlane.f32.xlu1 %v1181_v33  ;;  %v1177_v34 = vpop.f32.mrf.mxu0 }
 0xeda   :  { %v1178_v41 = vadd.f32 %v1177_v34, %v2894_v55 }
 0xedb   :  { %v2438_v35 = vpop.f32.mrf.mxu0 }
 0xedc   :  { %v1184_v0 = vsel %vm230_vm3, %v1178_v41, -inf }
 0xedd   :  { %1185 = vmax.xlane.f32.xlu1 %v1184_v0 }
 0xf62   :  { %v1183_v36 = vpop.xlane.xlu1 %1182 }
 0xf63   :  { %v1187_v37 = vsub.f32 %v1175_v29, %v1183_v36 }
 0xf65   :  { %v1189_v38 = vmul.f32 1.442695, %v1187_v37 }
 0xf66   :  { %v1186_v39 = vpop.xlane.xlu1 %1185 }
 0xf67   :  { %2667 = vpow2.f32 %v1189_v38  ;;  %v1188_v1 = vsub.f32 %v1178_v41, %v1186_v39 }
 0xf69   :  { %v1191_v42 = vmul.f32 1.442695, %v1188_v1 }
 0xf6b   :  { %2669 = vpow2.f32 %v1191_v42 }
 0xf74   :  { %v2668_v51 = vpop.eup %2667 }
 0xf75   :  { %v1193_v43 = vsel %vm230_vm3, %v2668_v51, 0.0 }
 0xf76   :  { %1194 = vadd.xlane.f32.xlu1 %v1193_v43 }
 0xf78   :  { %v2670_v44 = vpop.eup %2669 }
 0xf79   :  { %v1196_v46 = vsel %vm230_vm3, %v2670_v44, 0.0 }
 0xf7a   :  { %1197 = vadd.xlane.f32.xlu1 %v1196_v46 }
 0xf8b   :  { %1204 = vrot.lane.b32.xlu1 %v3094_v22, %s2720_s20  ;;  %s3366_s20 = smov 40  }
 0xf8f   :  { %1373 = vrot.lane.b32.xlu1 %v1129_v23, %s3362_s3 }
 0xf93   :  { %1494 = vrot.lane.b32.xlu1 %v1129_v23, %s3363_s5 }
 0xfff   :  { %v1195_v55 = vpop.xlane.xlu1 %1194 }
0x1000   :  { %2671 = vrcp.f32 %v1195_v55 }
0x1003   :  { %v1198_v47 = vpop.xlane.xlu1 %1197 }
0x1004   :  { %2673 = vrcp.f32 %v1198_v47 }
0x1007   :  { %v1205_v48 = vpop.permute.xlu1 %1204 }
0x1008   :  { %2440 = vmatpush3.bf16.msra.mxu0 %v1205_v48 }
0x1009   :  { %2445 = vmatprep.subr.bf16.mxu0 %v2713_v14 }
0x100b   :  { %v1374_v60 = vpop.permute.xlu1 %1373 }
0x100d   :  { %v2672_v49 = vpop.eup %2671 }
0x100e   :  { %v1201_v52 = vmul.f32 %v2672_v49, %v2668_v51 }
0x100f   :  { %v1495_v62 = vpop.permute.xlu1 %1494 }
0x1011   :  { %v2674_v50 = vpop.eup %2673 }
0x1012   :  { %v1202_v53 = vmul.f32 %v2674_v50, %v2670_v44 }
0x1014   :  { %v1203_v54 = vpack.c.bf16 %v1202_v53, %v1201_v52 }
0x1016   :  { %2442 = vmatmul.mubr.msk.bf16.vlgmr.msra.gmra.mxu0 %vm230_vm3, %v1203_v54 }
0x1017   :  { %2446 = vmatpush3.bf16.xpose.msra.mxu0 %v1260_v31  ;;  %2447 = vmatprep.mubr.msk.bf16.mxu0 %vm2714_vm1, %v2713_v14 }
0x1018   :  { %2457 = vmatprep.subr.bf16.mxu0 %v2713_v14 }
0x101e   :  { %2448 = vmatmul.mubr.msk.bf16.vlgmr.msra.gmra.mxu0 %vm182_vm2, %v1253_v56 }
0x101f   :  { %2458 = vmatpush3.bf16.xpose.msra.mxu0 %v1381_v58  ;;  %2459 = vmatprep.mubr.msk.bf16.mxu0 %vm2714_vm1, %v2713_v14 }
0x1020   :  { %2469 = vmatprep.subr.bf16.mxu0 %v2713_v14 }
0x1026   :  { %2460 = vmatmul.mubr.msk.bf16.vlgmr.msra.gmra.mxu0 %vm182_vm2, %v1374_v60 }
0x1027   :  { %2470 = vmatpush3.bf16.xpose.msra.mxu0 %v1502_v61  ;;  %2471 = vmatprep.mubr.msk.bf16.mxu0 %vm2714_vm1, %v2713_v14 }
0x1028   :  { %2481 = vmatprep.subr.bf16.mxu0 %v2713_v14 }
0x102e   :  { %2472 = vmatmul.mubr.msk.bf16.vlgmr.msra.gmra.mxu0 %vm182_vm2, %v1495_v62 }
0x102f   :  { %2485 = vmatprep.mubr.msk.bf16.mxu0 %vm2714_vm1, %v2713_v14 }
0x10d6   :  { %v3139_v63 = vpop.f32.mrf.mxu0 }
0x10d8   :  { %v2443_v2 = vpop.f32.mrf.mxu0 }
0x10da   :  { %v3141_v3 = vpop.f32.mrf.mxu0 }
0x10dc   :  { %v2444_v4 = vpop.f32.mrf.mxu0 }
0x10de   :  { %v1296_v5 = vpop.f32.mrf.mxu0 }
0x10df   :  { %v1297_v7 = vadd.f32 %v2711_v6, %v1296_v5 }
0x10e0   :  { %v2449_v8 = vpop.f32.mrf.mxu0 }
0x10e1   :  { %v1303_v9 = vsel %vm230_vm3, %v1297_v7, -inf }
0x10e2   :  { %1304 = vmax.xlane.f32.xlu0 %v1303_v9  ;;  %v1299_v10 = vpop.f32.mrf.mxu0 }
0x10e3   :  { %v1300_v12 = vadd.f32 %v2712_v11, %v1299_v10 }
0x10e4   :  { %v2450_v13 = vpop.f32.mrf.mxu0 }
0x10e5   :  { %v1306_v15 = vsel %vm230_vm3, %v1300_v12, -inf }
0x10e6   :  { %1307 = vmax.xlane.f32.xlu1 %v1306_v15  ;;  %v1417_v16 = vpop.f32.mrf.mxu0 }
0x10e7   :  { %v1418_v17 = vadd.f32 %v2711_v6, %v1417_v16 }
0x10e8   :  { %v2461_v18 = vpop.f32.mrf.mxu0 }
0x10e9   :  { %v1424_v19 = vsel %vm230_vm3, %v1418_v17, -inf }
0x10ea   :  { %1425 = vmax.xlane.f32.xlu0 %v1424_v19  ;;  %v1420_v20 = vpop.f32.mrf.mxu0 }
0x10eb   :  { %v1421_v21 = vadd.f32 %v2712_v11, %v1420_v20 }
0x10ec   :  { %v2462_v28 = vpop.f32.mrf.mxu0 }
0x10ed   :  { %v1427_v32 = vsel %vm230_vm3, %v1421_v21, -inf }
0x10ee   :  { %1428 = vmax.xlane.f32.xlu0 %v1427_v32  ;;  %v1538_v23 = vpop.f32.mrf.mxu0 }
0x10ef   :  { %v1539_v24 = vadd.f32 %v2711_v6, %v1538_v23 }
0x10f0   :  { %v2473_v26 = vpop.f32.mrf.mxu0 }
0x10f1   :  { %v1545_v27 = vsel %vm230_vm3, %v1539_v24, -inf }
0x10f2   :  { %1546 = vmax.xlane.f32.xlu0 %v1545_v27  ;;  %v1541_v29 = vpop.f32.mrf.mxu0 }
0x10f3   :  { %v1542_v30 = vadd.f32 %v2712_v11, %v1541_v29 }
0x10f4   :  { %v2474_v33 = vpop.f32.mrf.mxu0 }
0x10f5   :  { %v1548_v34 = vsel %vm230_vm3, %v1542_v30, -inf  ;;  %v2599_v33 = vld [vmem:[%s3336_s6 + $0x18] sm:$0xff]  }
0x10f6   :  { %1549 = vmax.xlane.f32.xlu1 %v1548_v34  ;;  %2482 = vmatpush3.bf16.msra.mxu0 %v2599_v33 }
0x10f7   :  { %2483 = vmatprep.subr.bf16.mxu0 %v2713_v14 }
0x116b   :  { %v1305_v41 = vpop.xlane.xlu0 %1304 }
0x116c   :  { %v1309_v35 = vsub.f32 %v1297_v7, %v1305_v41 }
0x116e   :  { %v1311_v0 = vmul.f32 1.442695, %v1309_v35 }
0x116f   :  { %v1308_v36 = vpop.xlane.xlu1 %1307 }
0x1170   :  { %2675 = vpow2.f32 %v1311_v0  ;;  %v1310_v37 = vsub.f32 %v1300_v12, %v1308_v36 }
0x1172   :  { %v1313_v38 = vmul.f32 1.442695, %v1310_v37 }
0x1173   :  { %v1426_v39 = vpop.xlane.xlu0 %1425 }
0x1174   :  { %2677 = vpow2.f32 %v1313_v38  ;;  %v1430_v1 = vsub.f32 %v1418_v17, %v1426_v39  ;;  %v2600_v39 = vld [vmem:[%s3336_s6 + $0x10] sm:$0xff]  }
0x1175   :  { %2484 = vmatpush3.bf16.msra.mxu0 %v2600_v39  ;;  %v2604_v39 = vld [vmem:[%s3341_s12 + $0x70] sm:$0xff]  }
0x1176   :  { %v1432_v42 = vmul.f32 1.442695, %v1430_v1  ;;  %2497 = vmatprep.subr.bf16.mxu0 %v2713_v14 }
0x1177   :  { %v1429_v51 = vpop.xlane.xlu0 %1428 }
0x1178   :  { %2679 = vpow2.f32 %v1432_v42  ;;  %v1431_v43 = vsub.f32 %v1421_v21, %v1429_v51 }
0x117a   :  { %v1434_v44 = vmul.f32 1.442695, %v1431_v43 }
0x117b   :  { %v1547_v46 = vpop.xlane.xlu0 %1546 }
0x117c   :  { %2681 = vpow2.f32 %v1434_v44  ;;  %v1551_v55 = vsub.f32 %v1539_v24, %v1547_v46 }
0x117d   :  { %v2676_v47 = vpop.eup %2675 }
0x117e   :  { %v1553_v48 = vmul.f32 1.442695, %v1551_v55  ;;  %v1315_v49 = vsel %vm230_vm3, %v2676_v47, 0.0 }
0x117f   :  { %1316 = vadd.xlane.f32.xlu0 %v1315_v49  ;;  %v1550_v58 = vpop.xlane.xlu1 %1549 }
0x1180   :  { %2683 = vpow2.f32 %v1553_v48  ;;  %v1552_v59 = vsub.f32 %v1542_v30, %v1550_v58 }
0x1181   :  { %v2678_v25 = vpop.eup %2677 }
0x1182   :  { %v1318_v50 = vsel %vm230_vm3, %v2678_v25, 0.0  ;;  %v1555_v60 = vmul.f32 1.442695, %v1552_v59 }
0x1183   :  { %1319 = vadd.xlane.f32.xlu1 %v1318_v50 }
0x1184   :  { %2685 = vpow2.f32 %v1555_v60 }
0x1185   :  { %v2680_v52 = vpop.eup %2679 }
0x1186   :  { %v1436_v53 = vsel %vm230_vm3, %v2680_v52, 0.0 }
0x1187   :  { %1437 = vadd.xlane.f32.xlu0 %v1436_v53 }
0x1189   :  { %v2682_v54 = vpop.eup %2681 }
0x118a   :  { %v1439_v56 = vsel %vm230_vm3, %v2682_v54, 0.0 }
0x118b   :  { %1440 = vadd.xlane.f32.xlu1 %v1439_v56 }
0x118d   :  { %v2684_v31 = vpop.eup %2683 }
0x118e   :  { %v1557_v57 = vsel %vm230_vm3, %v2684_v31, 0.0 }
0x118f   :  { %1558 = vadd.xlane.f32.xlu0 %v1557_v57 }
0x1191   :  { %v2686_v61 = vpop.eup %2685 }
0x1192   :  { %v1560_v62 = vsel %vm230_vm3, %v2686_v61, 0.0 }
0x119c   :  { %1447 = vrot.lane.b32.xlu1 %v3094_v22, %s3364_s1 }
0x11a5   :  { %1326 = vrot.lane.b32.xlu0 %v3094_v22, %s3365_s29 }
0x11c0   :  { %1561 = vadd.xlane.f32.xlu1 %v1560_v62 }
0x11d1   :  { %1568 = vrot.lane.b32.xlu1 %v3094_v22, %s3366_s20 }
0x1208   :  { %v1317_v2 = vpop.xlane.xlu0 %1316 }
0x1209   :  { %2687 = vrcp.f32 %v1317_v2 }
0x120c   :  { %v1320_v4 = vpop.xlane.xlu1 %1319 }
0x120d   :  { %2689 = vrcp.f32 %v1320_v4 }
0x1210   :  { %v1438_v5 = vpop.xlane.xlu0 %1437 }
0x1211   :  { %2691 = vrcp.f32 %v1438_v5 }
0x1214   :  { %v1441_v6 = vpop.xlane.xlu1 %1440 }
0x1215   :  { %2693 = vrcp.f32 %v1441_v6 }
0x1216   :  { %v2688_v7 = vpop.eup %2687 }
0x1217   :  { %v1323_v10 = vmul.f32 %v2688_v7, %v2676_v47 }
0x1218   :  { %v1559_v8 = vpop.xlane.xlu0 %1558  ;;  %v1448_v22 = vpop.permute.xlu1 %1447 }
0x1219   :  { %2695 = vrcp.f32 %v1559_v8 }
0x121a   :  { %v2690_v9 = vpop.eup %2689 }
0x121b   :  { %v1324_v11 = vmul.f32 %v2690_v9, %v2678_v25 }
0x121c   :  { %v1327_v12 = vpop.permute.xlu0 %1326 }
0x121d   :  { %2452 = vmatpush3.bf16.msra.mxu1 %v1327_v12  ;;  %v1325_v13 = vpack.c.bf16 %v1324_v11, %v1323_v10 }
0x121e   :  { %2463 = vmatprep.subr.bf16.mxu1 %v2713_v14  ;;  %v2692_v15 = vpop.eup %2691 }
0x121f   :  { %v1444_v17 = vmul.f32 %v2692_v15, %v2680_v52 }
0x1220   :  { %2454 = vmatmul.mubr.msk.bf16.vlgmr.msra.gmra.mxu1 %vm230_vm3, %v1325_v13 }
0x1221   :  { %2464 = vmatpush3.bf16.msra.mxu1 %v1448_v22  ;;  %2465 = vmatprep.mubr.msk.bf16.mxu1 %vm2714_vm1, %v2713_v14 }
0x1222   :  { %v2694_v16 = vpop.eup %2693  ;;  %2475 = vmatprep.subr.bf16.mxu1 %v2713_v14 }
0x1223   :  { %v1445_v18 = vmul.f32 %v2694_v16, %v2682_v54 }
0x1225   :  { %v1446_v19 = vpack.c.bf16 %v1445_v18, %v1444_v17  ;;  %v2601_v18 = vld [vmem:[%s3338_s10 + $0x18] sm:$0xff]  }
0x1226   :  { %v2696_v28 = vpop.eup %2695 }
0x1227   :  { %v1565_v23 = vmul.f32 %v2696_v28, %v2684_v31 }
0x1228   :  { %2466 = vmatmul.mubr.msk.bf16.vlgmr.msra.gmra.mxu1 %vm230_vm3, %v1446_v19  ;;  %v2602_v19 = vld [vmem:[%s3338_s10 + $0x10] sm:$0xff]  }
0x1229   :  { %2477 = vmatprep.mubr.msk.bf16.mxu1 %vm2714_vm1, %v2713_v14 }
0x1249   :  { %v1562_v20 = vpop.xlane.xlu1 %1561 }
0x124a   :  { %2697 = vrcp.f32 %v1562_v20 }
0x124d   :  { %v1569_v21 = vpop.permute.xlu1 %1568 }
0x124e   :  { %2476 = vmatpush3.bf16.msra.mxu1 %v1569_v21 }
0x124f   :  { %2489 = vmatprep.subr.bf16.mxu1 %v2713_v14 }
0x1257   :  { %v2698_v32 = vpop.eup %2697 }
0x1258   :  { %v1566_v24 = vmul.f32 %v2698_v32, %v2686_v61 }
0x125a   :  { %v1567_v26 = vpack.c.bf16 %v1566_v24, %v1565_v23 }
0x125c   :  { %2478 = vmatmul.mubr.msk.bf16.vlgmr.msra.gmra.mxu1 %vm230_vm3, %v1567_v26 }
0x125d   :  { %2493 = vmatprep.mubr.msk.bf16.mxu1 %vm2714_vm1, %v2713_v14  ;;  %2490 = vmatpush3.bf16.msra.mxu1 %v2601_v18 }
0x125e   :  { %2491 = vmatprep.subr.bf16.mxu1 %v2713_v14 }
0x1261   :  { %2492 = vmatpush3.bf16.msra.mxu1 %v2602_v19 }
0x1262   :  { %2517 = vmatprep.subr.bf16.mxu1 %v2713_v14 }
0x12e0   :  { %v1366_v27 = vpop.f32.mrf.mxu1 }
0x12e2   :  { %v2455_v29 = vpop.f32.mrf.mxu1 }
0x12e3   :  { %v2208_v29 = vld [vmem:[%s3339_s8 + $0x1] ss:$0 sm:$0xff] }
0x12e4   :  { %v1369_v30 = vpop.f32.mrf.mxu1 }
0x12e5   :  { %v2568_v34 = vpack.i.bf16 %v1369_v30, %v1366_v27 }
0x12e6   :  { %v2456_v41 = vpop.f32.mrf.mxu1 }
0x12e7   :  { %2569 = vrot.lane.b32.xlu1 %v2568_v34, %s3367_s22  ;;  %v2209_v41 = vld [vmem:[%s3340_s9 + $0x1] ss:$0 sm:$0xff] }
0x12e8   :  { %v1487_v35 = vpop.f32.mrf.mxu1 }
0x12ea   :  { %v2467_v0 = vpop.f32.mrf.mxu1 }
0x12ec   :  { %v1490_v36 = vpop.f32.mrf.mxu1 }
0x12ed   :  { %v2573_v37 = vpack.i.bf16 %v1490_v36, %v1487_v35 }
0x12ee   :  { %v2468_v38 = vpop.f32.mrf.mxu1 }
0x12ef   :  { %2574 = vrot.lane.b32.xlu0 %v2573_v37, %s3368_s21  ;;  %v2603_v38 = vld [vmem:[%s3341_s12 + $0x78] sm:$0xff]  }
0x131c   :  { %v1608_v1 = vpop.f32.mrf.mxu1 }
0x131e   :  { %v2479_v42 = vpop.f32.mrf.mxu1 }
0x131f   :  { %v2606_v42 = vld [vmem:[%s3341_s12 + $0x60] sm:$0xff]  }
0x1320   :  { %v1611_v51 = vpop.f32.mrf.mxu1 }
0x1321   :  { %v2578_v43 = vpack.i.bf16 %v1611_v51, %v1608_v1  ;;  %v2605_v1 = vld [vmem:[%s3341_s12 + $0x68] sm:$0xff]   ;;  %v2607_v51 = vld [vmem:[%s3341_s12 + $0x58] sm:$0xff]  }
0x1322   :  { %v2480_v44 = vpop.f32.mrf.mxu1 }
0x1323   :  { %2579 = vrot.lane.b32.xlu1 %v2578_v43, %s3369_s30  ;;  %v2608_v43 = vld [vmem:[%s3341_s12 + $0x50] sm:$0xff]   ;;  %v2609_v44 = vld [vmem:[%s3341_s12 + $0x48] sm:$0xff]  }
0x1359   :  { %v2570_v46 = vpop.permute.xlu1 %2569 }
0x135a   :  { %v2572_v47 = vunpack.i.h.bf16 %v2570_v46  ;;  %v2571_v48 = vunpack.i.l.bf16 %v2570_v46  ;;  %v2610_v46 = vld [vmem:[%s3341_s12 + $0x40] sm:$0xff]  }
0x135c   :  { %v1640_v52 = vsel %vm182_vm2, %v3141_v3, %v2572_v47  ;;  %v1639_v53 = vsel %vm182_vm2, %v3139_v63, %v2571_v48  ;;  %v2202_v63 = vld [vmem:[%s3337_s7 + $0x1] ss:$0 sm:$0xff] }
0x1361   :  { %v2575_v55 = vpop.permute.xlu0 %2574 }
0x1362   :  { %v2577_v49 = vunpack.i.h.bf16 %v2575_v55  ;;  %v2576_v25 = vunpack.i.l.bf16 %v2575_v55  ;;  %v2215_v55 = vld [vmem:[%s3342_s11 + $0x1] ss:$0 sm:$0xff] }
0x1364   :  { %v1641_v31 = vsel %vm230_vm3, %v1639_v53, %v2576_v25  ;;  %v1642_v57 = vsel %vm230_vm3, %v1640_v52, %v2577_v49 }
0x1395   :  { %v2580_v50 = vpop.permute.xlu1 %2579 }
0x1396   :  { %v2582_v54 = vunpack.i.h.bf16 %v2580_v50  ;;  %v2581_v56 = vunpack.i.l.bf16 %v2580_v50 }
0x1398   :  { %v1643_v58 = vsel %vm693_vm4, %v1641_v31, %v2581_v56  ;;  %v1644_v59 = vsel %vm693_vm4, %v1642_v57, %v2582_v54 }
0x1399   :  { %v1645_v60 = vpack.c.bf16 %v1644_v59, %v1643_v58 }
0x139b   :  { %2486 = vmatmul.mubr.msk.bf16.vlgmr.msra.gmra.mxu0 %vm63_vm0, %v1645_v60 }
0x139c   :  { %2513 = vmatprep.mubr.msk.bf16.mxu0 %vm2714_vm1, %v2713_v14  ;;  %2498 = vmatpush3.bf16.msra.mxu0 %v2603_v38 }
0x139d   :  { %2499 = vmatprep.subr.bf16.mxu0 %v2713_v14 }
0x13a0   :  { %2500 = vmatpush3.bf16.msra.mxu0 %v2604_v39 }
0x13a1   :  { %2501 = vmatprep.subr.bf16.mxu0 %v2713_v14 }
0x13a4   :  { %2502 = vmatpush3.bf16.msra.mxu0 %v2605_v1  ;;  %v2616_v1 = vld [vmem:[%s3344_s16 + $0x10] sm:$0xff]  }
0x13a5   :  { %2503 = vmatprep.subr.bf16.mxu0 %v2713_v14 }
0x13a8   :  { %2504 = vmatpush3.bf16.msra.mxu0 %v2606_v42  ;;  %v2079_v42 = vsel %vm63_vm0, %v2616_v1, 0 }
0x13a9   :  { %2505 = vmatprep.subr.bf16.mxu0 %v2713_v14 }
0x13ac   :  { %2506 = vmatpush3.bf16.msra.mxu0 %v2607_v51  ;;  %v2617_v51 = vld [vmem:[%s3344_s16 + $0x8] sm:$0xff]  }
0x13ad   :  { %2507 = vmatprep.subr.bf16.mxu0 %v2713_v14 }
0x13b0   :  { %2508 = vmatpush3.bf16.msra.mxu0 %v2608_v43  ;;  %v2076_v43 = vsel %vm63_vm0, %v2617_v51, 0 }
0x13b1   :  { %2509 = vmatprep.subr.bf16.mxu0 %v2713_v14 }
0x13b4   :  { %2510 = vmatpush3.bf16.msra.mxu0 %v2609_v44  ;;  %v2618_v44 = vld [vmem:[%s3344_s16] sm:$0xff]  }
0x13b5   :  { %2511 = vmatprep.subr.bf16.mxu0 %v2713_v14 }
0x13b8   :  { %2512 = vmatpush3.bf16.msra.mxu0 %v2610_v46  ;;  %v2073_v46 = vsel %vm63_vm0, %v2618_v44, 0 }
0x145b   :  { %v1708_v3 = vpop.f32.mrf.mxu0 }
0x145c   :  { %v1709_v61 = vadd.f32 %v2202_v63, %v1708_v3 }
0x145d   :  { %v2487_v62 = vpop.f32.mrf.mxu0 }
0x145e   :  { %v3205_v2 = vadd.f32 %v1709_v61, %v3061_v40 }
0x145f   :  { %v1711_v4 = vpop.f32.mrf.mxu0 }
0x1460   :  { %v1712_v5 = vadd.f32 %v2202_v63, %v1711_v4  ;;  %v1721_v6 = vsel %vm63_vm0, %v3205_v2, 0.0 }
0x1461   :  { %1722 = vadd.xlane.f32.xlu0 %v1721_v6  ;;  %v2488_v7 = vpop.f32.mrf.mxu0 }
0x1462   :  { %v3210_v8 = vadd.f32 %v1712_v5, %v3066_v45 }
0x1464   :  { %v1724_v9 = vsel %vm63_vm0, %v3210_v8, 0.0 }
0x1465   :  { %1725 = vadd.xlane.f32.xlu1 %v1724_v9 }
0x14ea   :  { %v1723_v10 = vpop.xlane.xlu0 %1722 }
0x14eb   :  { %v1727_v11 = vmul.f32 0.03125, %v1723_v10 }
0x14ed   :  { %v1729_v12 = vsub.f32 %v3205_v2, %v1727_v11 }
0x14ee   :  { %v1726_v40 = vpop.xlane.xlu1 %1725 }
0x14ef   :  { %v1728_v13 = vmul.f32 0.03125, %v1726_v40  ;;  %v1731_v15 = vmul.f32 %v1729_v12, %v1729_v12 }
0x14f1   :  { %v1730_v22 = vsub.f32 %v3210_v8, %v1728_v13  ;;  %v1733_v16 = vsel %vm63_vm0, %v1731_v15, 0.0 }
0x14f2   :  { %1734 = vadd.xlane.f32.xlu0 %v1733_v16 }
0x14f3   :  { %v1732_v17 = vmul.f32 %v1730_v22, %v1730_v22 }
0x14f5   :  { %v1736_v45 = vsel %vm63_vm0, %v1732_v17, 0.0 }
0x14f6   :  { %1737 = vadd.xlane.f32.xlu0 %v1736_v45 }
0x157b   :  { %v1735_v20 = vpop.xlane.xlu0 %1734 }
0x157c   :  { %v1739_v21 = vmul.f32 0.03125, %v1735_v20 }
0x157e   :  { %v1741_v28 = vadd.f32 1e-05, %v1739_v21  ;;  %v2611_v21 = vld [vmem:[%s3344_s16 + $0x38] sm:$0xff]  }
0x157f   :  { %v1738_v32 = vpop.xlane.xlu0 %1737 }
0x1580   :  { %2699 = vrsqrt.f32 %v1741_v28  ;;  %v1740_v23 = vmul.f32 0.03125, %v1738_v32  ;;  %v2094_v28 = vsel %vm63_vm0, %v2611_v21, 0 }
0x1582   :  { %v1742_v24 = vadd.f32 1e-05, %v1740_v23 }
0x1584   :  { %2701 = vrsqrt.f32 %v1742_v24  ;;  %v2614_v24 = vld [vmem:[%s3344_s16 + $0x20] sm:$0xff]  }
0x158d   :  { %v2700_v26 = vpop.eup %2699 }
0x158e   :  { %v1745_v27 = vmul.f32 %v2700_v26, %v1729_v12  ;;  %v2236_v12 = vld [vmem:[%s3343_s13 + $0x1] ss:$0 sm:$0xff]  ;;  %v2085_v26 = vsel %vm63_vm0, %v2614_v24, 0 }
0x1590   :  { %v1753_v34 = vmul.f32 %v2208_v29, %v1745_v27  ;;  %v2615_v27 = vld [vmem:[%s3344_s16 + $0x18] sm:$0xff]  }
0x1591   :  { %v2702_v30 = vpop.eup %2701 }
0x1592   :  { %v1746_v33 = vmul.f32 %v2702_v30, %v1730_v22  ;;  %v1761_v0 = vadd.f32 %v2209_v41, %v1753_v34 }
0x1594   :  { %v1754_v35 = vmul.f32 %v2208_v29, %v1746_v33  ;;  %v2082_v29 = vsel %vm63_vm0, %v2615_v27, 0 }
0x1596   :  { %v1762_v36 = vadd.f32 %v2209_v41, %v1754_v35 }
0x1598   :  { %v1763_v37 = vpack.c.bf16 %v1762_v36, %v1761_v0 }
0x159a   :  { %2494 = vmatmul.mubr.msk.bf16.vlgmr.msra.gmra.mxu1 %vm63_vm0, %v1763_v37 }
0x159b   :  { %2533 = vmatprep.mubr.msk.bf16.mxu1 %vm2714_vm1, %v2713_v14  ;;  %2518 = vmatpush3.bf16.xpose.msra.mxu1 %v2094_v28 }
0x159c   :  { %2519 = vmatprep.subr.bf16.mxu1 %v2713_v14 }
0x165a   :  { %v1826_v47 = vpop.f32.mrf.mxu1 }
0x165b   :  { %v1827_v48 = vadd.f32 %v2215_v55, %v1826_v47 }
0x165c   :  { %v2495_v49 = vpop.f32.mrf.mxu1 }
0x165d   :  { %v1835_v25 = vmul.f32 0.044715, %v1827_v48  ;;  %v1833_v5 = vmul.f32 0.5, %v1827_v48 }
0x165e   :  { %v1829_v50 = vpop.f32.mrf.mxu1 }
0x165f   :  { %v1837_v52 = vmul.f32 %v1835_v25, %v1827_v48  ;;  %v1830_v53 = vadd.f32 %v2215_v55, %v1829_v50 }
0x1660   :  { %v2496_v54 = vpop.f32.mrf.mxu1 }
0x1661   :  { %v1839_v56 = vmul.f32 %v1837_v52, %v1827_v48  ;;  %v1836_v31 = vmul.f32 0.044715, %v1830_v53  ;;  %v1834_v6 = vmul.f32 0.5, %v1830_v53 }
0x1663   :  { %v1841_v57 = vadd.f32 %v1839_v56, %v1827_v48  ;;  %v1838_v58 = vmul.f32 %v1836_v31, %v1830_v53 }
0x1665   :  { %v1843_v59 = vmul.f32 0.7978846, %v1841_v57  ;;  %v1840_v60 = vmul.f32 %v1838_v58, %v1830_v53  ;;  %v2246_v57 = vld [vmem:[%s3346_s15] ss:$0 sm:$0xff] }
0x1667   :  { %2703 = vtanh.f32 %v1843_v59  ;;  %v1842_v63 = vadd.f32 %v1840_v60, %v1830_v53 }
0x1669   :  { %v1844_v3 = vmul.f32 0.7978846, %v1842_v63 }
0x166b   :  { %2705 = vtanh.f32 %v1844_v3 }
0x1674   :  { %v2704_v61 = vpop.eup %2703 }
0x1675   :  { %v1847_v62 = vadd.f32 1.0, %v2704_v61 }
0x1677   :  { %v1849_v9 = vmul.f32 %v1847_v62, %v1833_v5 }
0x1678   :  { %v2706_v4 = vpop.eup %2705 }
0x1679   :  { %v1848_v7 = vadd.f32 1.0, %v2706_v4 }
0x167b   :  { %v1850_v10 = vmul.f32 %v1848_v7, %v1834_v6 }
0x167d   :  { %v1851_v11 = vpack.c.bf16 %v1850_v10, %v1849_v9 }
0x167f   :  { %2514 = vmatmul.mubr.bf16.vlgmr.msra.gmra.mxu0 %v1851_v11 }
0x173f   :  { %v1959_v40 = vpop.f32.mrf.mxu0 }
0x1740   :  { %v1960_v13 = vadd.f32 %v2236_v12, %v1959_v40 }
0x1741   :  { %v2515_v15 = vpop.f32.mrf.mxu0 }
0x1742   :  { %v1966_v22 = vadd.f32 %v1960_v13, %v3205_v2  ;;  %v2612_v2 = vld [vmem:[%s3344_s16 + $0x30] sm:$0xff]  }
0x1743   :  { %v1962_v16 = vpop.f32.mrf.mxu0  ;;  %v2091_v32 = vsel %vm63_vm0, %v2612_v2, 0 }
0x1744   :  { %v1963_v17 = vadd.f32 %v2236_v12, %v1962_v16  ;;  %v1970_v45 = vsel %vm63_vm0, %v1966_v22, 0.0  ;;  %2520 = vmatpush3.bf16.xpose.msra.mxu1 %v2091_v32 }
0x1745   :  { %1971 = vadd.xlane.f32.xlu0 %v1970_v45  ;;  %v2516_v18 = vpop.f32.mrf.mxu0  ;;  %2521 = vmatprep.subr.bf16.mxu1 %v2713_v14 }
0x1746   :  { %v1967_v19 = vadd.f32 %v1963_v17, %v3210_v8  ;;  %v2613_v8 = vld [vmem:[%s3344_s16 + $0x28] sm:$0xff]  }
0x1747   :  { %v2088_v23 = vsel %vm63_vm0, %v2613_v8, 0 }
0x1748   :  { %v1973_v20 = vsel %vm63_vm0, %v1967_v19, 0.0 }
0x1749   :  { %1974 = vadd.xlane.f32.xlu1 %v1973_v20 }
0x174c   :  { %2522 = vmatpush3.bf16.xpose.msra.mxu1 %v2088_v23 }
0x174d   :  { %2523 = vmatprep.subr.bf16.mxu1 %v2713_v14 }
0x1754   :  { %2524 = vmatpush3.bf16.xpose.msra.mxu1 %v2085_v26 }
0x1755   :  { %2525 = vmatprep.subr.bf16.mxu1 %v2713_v14 }
0x175c   :  { %2526 = vmatpush3.bf16.xpose.msra.mxu1 %v2082_v29 }
0x175d   :  { %2527 = vmatprep.subr.bf16.mxu1 %v2713_v14 }
0x1764   :  { %2528 = vmatpush3.bf16.xpose.msra.mxu1 %v2079_v42 }
0x1765   :  { %2529 = vmatprep.subr.bf16.mxu1 %v2713_v14 }
0x176c   :  { %2530 = vmatpush3.bf16.xpose.msra.mxu1 %v2076_v43 }
0x176d   :  { %2531 = vmatprep.subr.bf16.mxu1 %v2713_v14  ;;  %v2245_v14 = vld [vmem:[%s3345_s14] ss:$0 sm:$0xff] }
0x1774   :  { %2532 = vmatpush3.bf16.xpose.msra.mxu1 %v2073_v46 }
0x17ce   :  { %v1972_v30 = vpop.xlane.xlu0 %1971 }
0x17cf   :  { %v1976_v33 = vmul.f32 0.03125, %v1972_v30 }
0x17d1   :  { %v1978_v34 = vsub.f32 %v1966_v22, %v1976_v33 }
0x17d2   :  { %v1975_v41 = vpop.xlane.xlu1 %1974 }
0x17d3   :  { %v1977_v35 = vmul.f32 0.03125, %v1975_v41  ;;  %v1980_v0 = vmul.f32 %v1978_v34, %v1978_v34 }
0x17d5   :  { %v1979_v36 = vsub.f32 %v1967_v19, %v1977_v35  ;;  %v1982_v37 = vsel %vm63_vm0, %v1980_v0, 0.0 }
0x17d6   :  { %1983 = vadd.xlane.f32.xlu0 %v1982_v37 }
0x17d7   :  { %v1981_v38 = vmul.f32 %v1979_v36, %v1979_v36 }
0x17d9   :  { %v1985_v39 = vsel %vm63_vm0, %v1981_v38, 0.0 }
0x17da   :  { %1986 = vadd.xlane.f32.xlu1 %v1985_v39 }
0x185f   :  { %v1984_v55 = vpop.xlane.xlu0 %1983 }
0x1860   :  { %v1988_v47 = vmul.f32 0.03125, %v1984_v55 }
0x1862   :  { %v1990_v48 = vadd.f32 1e-05, %v1988_v47 }
0x1863   :  { %v1987_v49 = vpop.xlane.xlu1 %1986 }
0x1864   :  { %2707 = vrsqrt.f32 %v1990_v48  ;;  %v1989_v25 = vmul.f32 0.03125, %v1987_v49 }
0x1866   :  { %v1991_v50 = vadd.f32 1e-05, %v1989_v25 }
0x1868   :  { %2709 = vrsqrt.f32 %v1991_v50 }
0x1871   :  { %v2708_v52 = vpop.eup %2707 }
0x1872   :  { %v1994_v53 = vmul.f32 %v2708_v52, %v1978_v34 }
0x1874   :  { %v2002_v31 = vmul.f32 %v2245_v14, %v1994_v53 }
0x1875   :  { %v2710_v54 = vpop.eup %2709 }
0x1876   :  { %v1995_v56 = vmul.f32 %v2710_v54, %v1979_v36  ;;  %v2010_v59 = vadd.f32 %v2246_v57, %v2002_v31 }
0x1878   :  { %v2003_v58 = vmul.f32 %v2245_v14, %v1995_v56 }
0x187a   :  { %v2011_v60 = vadd.f32 %v2246_v57, %v2003_v58 }
0x187c   :  { %v2012_v63 = vpack.c.bf16 %v2011_v60, %v2010_v59 }
0x187e   :  { %2534 = vmatmul.mubr.msk.bf16.vlgmr.msra.gmra.mxu1 %vm63_vm0, %v2012_v63 }
0x193e   :  { %v2130_v3 = vpop.f32.mrf.mxu1 }
0x193f   :  { %2137 = vst [vmem:[%s3347_s17] sm:$0xff] %v2130_v3 }
0x1940   :  { %v2535_v61 = vpop.f32.mrf.mxu1 }
0x1942   :  { %v2133_v62 = vpop.f32.mrf.mxu1 }
0x1943   :  { %2138 = vst [vmem:[%s3347_s17 + $0x8] sm:$0xff] %v2133_v62 }
0x1944   :  { %v2536_v4 = vpop.f32.mrf.mxu1 }

</bundles_post_ra>
